<compile_context>
chip_gen: v6e
topology: v6e:2x2x1
jax: 0.10.0
libtpu: 0.0.40
codegen_flags: <defaults>
</compile_context>

<pallas_src>
import numpy as np
import jax
import jax.numpy as jnp
from jax.experimental import pallas as pl
from jax.experimental.pallas import tpu as pltpu

# ---------------- MANO model dimensions (fixed by the model definition) ------
N_VERTS = 778
V_PAD = 896            # 7 * 128, lane-dense vertex axis
N_JOINTS = 16
N_SHAPE = 10
N_POSE = 45            # 15 joints * 3 axis-angle components
N_POSEDIRS = 135       # 15 joints * 9 (rotmat - I) entries
N_BASIS = N_POSEDIRS + 1   # +1 row for the rest shape (coefficient fixed to 1.0)
NCOMPS = 6             # PCA components (use_pca=True, ncomps=6)
ROT = 3                # global rotation dims
KINTREE_PARENTS = [-1, 0, 1, 2, 0, 4, 5, 0, 7, 8, 0, 10, 11, 0, 13, 14]
TIP_IDX_RIGHT = [745, 317, 444, 556, 673]
JOINT_REORDER = [0, 13, 14, 15, 16, 1, 2, 3, 17, 4, 5, 6, 18,
                 10, 11, 12, 19, 7, 8, 9, 20]


def _round_up(x, m):
    return ((x + m - 1) // m) * m


# ---------------------------- Pallas kernel ----------------------------------
def _mano_vert_kernel(pm_ref, a_ref, basis_ref, wT_ref, out_ref):
    # pm_ref:    (TB, 136)          pose blend coefficients + trailing 1.0
    # a_ref:     (1, 16*TB, 16)     skinning transforms, element-major:
    #                               row e*TB + b  = flattened 4x4 element e of batch b
    # basis_ref: (136, 3*V_PAD)     [posedirs ; v_shaped], coord-major flat
    # wT_ref:    (16, V_PAD)        skinning weights transposed (joint, vert)
    # out_ref:   (3, TB, V_PAD)     posed vertices, coordinate-major
    TB = pm_ref.shape[0]
    VP = wT_ref.shape[1]

    # fused pose blend-shapes + rest shape: one wide matmul
    vposed = jnp.dot(pm_ref[...], basis_ref[...],
                     preferred_element_type=jnp.float32)      # (TB, 3*VP)
    vx = vposed[:, 0:VP]
    vy = vposed[:, VP:2 * VP]
    vz = vposed[:, 2 * VP:3 * VP]

    # per-vertex 4x4 transform elements for the whole batch tile, one matmul
    twt = jnp.dot(a_ref[0], wT_ref[...],
                  preferred_element_type=jnp.float32)         # (16*TB, VP)

    def slab(e):                                              # (TB, VP) slab of element e
        return twt[e * TB:(e + 1) * TB, :]

    # apply T to homogeneous rest position [x, y, z, 1]; keep rows 0..2 only
    out_ref[0] = slab(0) * vx + slab(1) * vy + slab(2) * vz + slab(3)
    out_ref[1] = slab(4) * vx + slab(5) * vy + slab(6) * vz + slab(7)
    out_ref[2] = slab(8) * vx + slab(9) * vy + slab(10) * vz + slab(11)


def _skin_verts_pallas(pose_map, a_mat, posedirs, v_shaped, weights):
    """pose_map (B,135), a_mat (B,16,16), posedirs (V,3,135), v_shaped (V,3),
    weights (V,16)  ->  th_verts (B, 778, 3)."""
    B = pose_map.shape[0]
    f32 = jnp.float32

    TB = min(64, _round_up(B, 8))          # batch tile, multiple of 8
    Bpad = _round_up(B, TB)
    num_tiles = Bpad // TB
    pad_v = V_PAD - N_VERTS

    # --- pose blend coefficients augmented with a constant 1.0 column -------
    pm_aug = jnp.concatenate([pose_map, jnp.ones((B, 1), f32)], axis=1)
    pm_aug = jnp.pad(pm_aug, ((0, Bpad - B), (0, 0)))          # (Bpad, 136)

    # --- fused basis: [posedirs ; v_shaped], coord-major, lane-padded --------
    pd = jnp.transpose(posedirs, (2, 1, 0))                     # (135, 3, V)
    pd = jnp.pad(pd, ((0, 0), (0, 0), (0, pad_v)))              # (135, 3, V_PAD)
    pd = pd.reshape(N_POSEDIRS, 3 * V_PAD)
    vs = jnp.pad(v_shaped.T, ((0, 0), (0, pad_v)))              # (3, V_PAD)
    basis = jnp.concatenate([pd, vs.reshape(1, 3 * V_PAD)], axis=0)  # (136, 3*V_PAD)

    # --- skinning transforms, element-major per tile -------------------------
    a_pad = jnp.pad(a_mat, ((0, Bpad - B), (0, 0), (0, 0)))     # (Bpad, 16, 16)
    a_em = a_pad.reshape(num_tiles, TB, 16, 16)
    a_em = jnp.transpose(a_em, (0, 2, 1, 3))                    # (tiles, elem, TB, joint)
    a_em = a_em.reshape(num_tiles, 16 * TB, 16)

    # --- skinning weights, lane-padded ---------------------------------------
    wT = jnp.pad(weights.T, ((0, 0), (0, pad_v)))               # (16, V_PAD)

    verts_cl = pl.pallas_call(
        _mano_vert_kernel,
        out_shape=jax.ShapeDtypeStruct((3, Bpad, V_PAD), f32),
        grid_spec=pltpu.PrefetchScalarGridSpec(
            num_scalar_prefetch=0,
            grid=(num_tiles,),
            in_specs=[
                pl.BlockSpec((TB, N_BASIS), lambda t: (t, 0)),
                pl.BlockSpec((1, 16 * TB, 16), lambda t: (t, 0, 0)),
                pl.BlockSpec((N_BASIS, 3 * V_PAD), lambda t: (0, 0)),
                pl.BlockSpec((N_JOINTS, V_PAD), lambda t: (0, 0)),
            ],
            out_specs=pl.BlockSpec((3, TB, V_PAD), lambda t: (0, t, 0)),
        ),
        compiler_params=pltpu.CompilerParams(
            dimension_semantics=("parallel",)),
    )(pm_aug, a_em, basis, wT)

    # back to PyTorch convention (B, 778, 3)
    th_verts = jnp.transpose(verts_cl, (1, 2, 0))[:B, :N_VERTS, :]
    return th_verts


# -------------------------- plain-JAX glue ------------------------------------
def batch_rodrigues(axisang):
    """axisang: (N, 3) -> flattened rotation matrices (N, 9). Matches manopth."""
    norm = jnp.linalg.norm(axisang + 1e-8, axis=1, keepdims=True)
    half = norm * 0.5
    v_cos = jnp.cos(half)
    v_sin = jnp.sin(half)
    quat = jnp.concatenate([v_cos, v_sin * (axisang / norm)], axis=1)
    quat = quat / jnp.linalg.norm(quat, axis=1, keepdims=True)
    w, x, y, z = quat[:, 0], quat[:, 1], quat[:, 2], quat[:, 3]
    w2, x2, y2, z2 = w * w, x * x, y * y, z * z
    wx, wy, wz = w * x, w * y, w * z
    xy, xz, yz = x * y, x * z, y * z
    rot = jnp.stack([w2 + x2 - y2 - z2, 2 * xy - 2 * wz, 2 * wy + 2 * xz,
                     2 * wz + 2 * xy, w2 - x2 + y2 - z2, 2 * yz - 2 * wx,
                     2 * xz - 2 * wy, 2 * wx + 2 * yz, w2 - x2 - y2 + z2],
                    axis=1)
    return rot


def _with_zeros(m34):
    """(B, 3, 4) -> (B, 4, 4) with bottom row [0, 0, 0, 1]."""
    B = m34.shape[0]
    bottom = jnp.broadcast_to(
        jnp.array([[[0., 0., 0., 1.]]], jnp.float32), (B, 1, 4))
    return jnp.concatenate([m34, bottom], axis=1)


def mano_forward(params, th_pose_coeffs, use_pallas=True):
    """Forward pass with default args (th_betas=0, th_trans=0, root_palm=0,
    center_idx=None, side='right', use_pca=True, flat_hand_mean=True)."""
    B = th_pose_coeffs.shape[0]
    f32 = jnp.float32

    # --- PCA pose space -> full 45-dim pose, plus global rotation ---
    sel = params['hands_components'][:NCOMPS]                  # (6, 45)
    hand_pose = th_pose_coeffs[:, ROT:ROT + NCOMPS] @ sel      # (B, 45)
    full_pose = jnp.concatenate(
        [th_pose_coeffs[:, :ROT], params['hands_mean'][None] + hand_pose],
        axis=1)                                                # (B, 48)

    rot_mats = batch_rodrigues(full_pose.reshape(-1, 3)).reshape(B, 16, 3, 3)
    root_rot = rot_mats[:, 0]                                  # (B, 3, 3)
    rot_map = rot_mats[:, 1:]                                  # (B, 15, 3, 3)
    eye = jnp.eye(3, dtype=f32).reshape(1, 1, 3, 3)
    pose_map = (rot_map - eye).reshape(B, N_POSEDIRS)          # (B, 135)

    # --- rest shape & joints (th_betas default is zero-norm -> model betas) ---
    v_shaped = (jnp.einsum('vck,k->vc', params['shapedirs'], params['betas'])
                + params['v_template'])                        # (778, 3)
    th_j0 = params['J_regressor'] @ v_shaped                   # (16, 3)
    th_j = jnp.broadcast_to(th_j0[None], (B, N_JOINTS, 3))

    # --- kinematic chain (tiny 4x4 math, plain JAX) ---
    results = [None] * N_JOINTS
    results[0] = _with_zeros(
        jnp.concatenate([root_rot, th_j[:, 0, :, None]], axis=2))
    for i in range(1, N_JOINTS):
        parent = KINTREE_PARENTS[i]
        joint_rot = rot_map[:, i - 1]
        rel = _with_zeros(jnp.concatenate(
            [joint_rot, (th_j[:, i] - th_j[:, parent])[:, :, None]], axis=2))
        results[i] = results[parent] @ rel
    results_global = jnp.stack(results, axis=1)                # (B, 16, 4, 4)

    # --- remove rest-pose joint positions: A_i = G_i - pack(G_i @ [j_i; 0]) ---
    a_cols = []
    for i in range(N_JOINTS):
        jh = jnp.concatenate([th_j[:, i], jnp.zeros((B, 1), f32)], axis=1)
        tmp = results[i] @ jh[:, :, None]                      # (B, 4, 1)
        packed = jnp.concatenate([jnp.zeros((B, 4, 3), f32), tmp], axis=2)
        a_cols.append((results[i] - packed).reshape(B, 16))
    a_mat = jnp.stack(a_cols, axis=2)                          # (B, 16elem, 16joint)

    # --- heavy per-vertex work ---
    if use_pallas:
        th_verts = _skin_verts_pallas(pose_map, a_mat, params['posedirs'],
                                      v_shaped, params['weights'])
    else:
        # pure-JAX reference of the same computation
        v_posed = (v_shaped[None]
                   + jnp.einsum('vck,bk->bvc', params['posedirs'], pose_map))
        weights_T = params['weights'].T                        # (16, 778)
        th_T = jnp.einsum('bej,jv->bev', a_mat, weights_T).reshape(B, 4, 4,
                                                                   N_VERTS)
        rest_h = jnp.concatenate(
            [jnp.transpose(v_posed, (0, 2, 1)),
             jnp.ones((B, 1, N_VERTS), f32)], axis=1)           # (B, 4, 778)
        th_verts = jnp.einsum('brkv,bkv->bvr', th_T, rest_h)[:, :, :3]

    # --- joints, finger tips, reorder ---
    th_jtr = results_global[:, :, :3, 3]                        # (B, 16, 3)
    tips = th_verts[:, jnp.array(TIP_IDX_RIGHT), :]             # (B, 5, 3)
    th_jtr = jnp.concatenate([th_jtr, tips], axis=1)            # (B, 21, 3)
    th_jtr = th_jtr[:, jnp.array(JOINT_REORDER), :]

    # th_trans defaults to zero-norm and center_idx is None -> no recentering.
    # TODO(synk): dynamic torch.norm()==0 / root_palm python branches are
    # resolved statically here (default arguments of the torch forward).
    return th_verts * 1000.0, th_jtr * 1000.0


# -------------------------- synthetic parameters ------------------------------
def init_mano_params(key):
    ks = jax.random.split(key, 7)
    p = {}
    p['betas'] = 0.1 * jax.random.normal(ks[0], (N_SHAPE,), jnp.float32)
    p['shapedirs'] = 0.01 * jax.random.normal(
        ks[1], (N_VERTS, 3, N_SHAPE), jnp.float32)
    p['posedirs'] = 0.001 * jax.random.normal(
        ks[2], (N_VERTS, 3, N_POSEDIRS), jnp.float32)
    p['v_template'] = 0.01 * jax.random.normal(
        ks[3], (N_VERTS, 3), jnp.float32)
    jreg = jax.random.uniform(ks[4], (N_JOINTS, N_VERTS), jnp.float32)
    p['J_regressor'] = jreg / jnp.sum(jreg, axis=1, keepdims=True)
    w = jax.random.uniform(ks[5], (N_VERTS, N_JOINTS), jnp.float32)
    p['weights'] = w / jnp.sum(w, axis=1, keepdims=True)
    p['hands_components'] = 0.1 * jax.random.normal(
        ks[6], (N_POSE, N_POSE), jnp.float32)
    p['hands_mean'] = jnp.zeros((N_POSE,), jnp.float32)   # flat_hand_mean=True
    return p


# ------------------------------------ main ------------------------------------
if __name__ == "__main__":
    key = jax.random.PRNGKey(0)
    pkey, xkey = jax.random.split(key)
    params = init_mano_params(pkey)

    batch = 2
    # th_pose_coeffs: (batch, rot + ncomps) = (2, 9)
    th_pose_coeffs = jax.random.normal(xkey, (batch, ROT + NCOMPS), jnp.float32)

    verts, jtr = mano_forward(params, th_pose_coeffs, use_pallas=True)
    verts = jax.block_until_ready(verts)
    jtr = jax.block_until_ready(jtr)

    assert verts.shape == (batch, N_VERTS, 3)
    assert jtr.shape == (batch, 21, 3)
    assert bool(jnp.all(jnp.isfinite(verts))) and bool(jnp.all(jnp.isfinite(jtr)))

    # compare against a pure-JAX reference of the same math
    verts_ref, jtr_ref = mano_forward(params, th_pose_coeffs, use_pallas=False)
    np.testing.assert_allclose(np.asarray(verts), np.asarray(verts_ref),
                               rtol=1e-3, atol=1e-1)
    np.testing.assert_allclose(np.asarray(jtr), np.asarray(jtr_ref),
                               rtol=1e-3, atol=1e-1)

    print("KERNEL_OK")
</pallas_src>

<mosaic_0001>
module attributes {stable_mosaic.version = 11 : i64} {
  func.func @_mano_vert_kernel(%arg0: i32, %arg1: memref<8x136xf32, #tpu.memory_space<vmem>>, %arg2: memref<1x128x16xf32, #tpu.memory_space<vmem>>, %arg3: memref<136x2688xf32, #tpu.memory_space<vmem>>, %arg4: memref<16x896xf32, #tpu.memory_space<vmem>>, %arg5: memref<3x8x896xf32, #tpu.memory_space<vmem>>) attributes {dimension_semantics = [#tpu.dimension_semantics<parallel>], iteration_bounds = array<i64: 1>, scalar_prefetch = 0 : i64, scratch_operands = 0 : i64, tpu.core_type = #tpu.core_type<tc>, window_params = [{transform_indices = @transform_0, window_bounds = array<i64: 8, 136>}, {transform_indices = @transform_1, window_bounds = array<i64: 1, 128, 16>}, {pipeline_mode = #tpu.pipeline_mode<synchronous>, transform_indices = @transform_2, window_bounds = array<i64: 136, 2688>}, {pipeline_mode = #tpu.pipeline_mode<synchronous>, transform_indices = @transform_3, window_bounds = array<i64: 16, 896>}, {transform_indices = @transform_4, window_bounds = array<i64: 3, 8, 896>}]} {
    %c0 = arith.constant 0 : index
    %c0_0 = arith.constant 0 : index
    %0 = vector.load %arg1[%c0, %c0_0] : memref<8x136xf32, #tpu.memory_space<vmem>>, vector<8x136xf32>
    %c0_1 = arith.constant 0 : index
    %c0_2 = arith.constant 0 : index
    %1 = vector.load %arg3[%c0_1, %c0_2] : memref<136x2688xf32, #tpu.memory_space<vmem>>, vector<136x2688xf32>
    %cst = arith.constant dense<0.000000e+00> : vector<8x2688xf32>
    %2 = tpu.matmul %0, %1, %cst {dimension_numbers = #tpu.dot_dimension_numbers<[1], [0], [0], [1], [0, 0, 1, 1], [], []>} : vector<8x136xf32>, vector<136x2688xf32>, vector<8x2688xf32> -> vector<8x2688xf32>
    %3 = vector.extract_strided_slice %2 {offsets = [0, 0], sizes = [8, 896], strides = [1, 1]} : vector<8x2688xf32> to vector<8x896xf32>
    %4 = vector.extract_strided_slice %2 {offsets = [0, 896], sizes = [8, 896], strides = [1, 1]} : vector<8x2688xf32> to vector<8x896xf32>
    %5 = vector.extract_strided_slice %2 {offsets = [0, 1792], sizes = [8, 896], strides = [1, 1]} : vector<8x2688xf32> to vector<8x896xf32>
    %c0_3 = arith.constant 0 : index
    %c0_4 = arith.constant 0 : index
    %c0_5 = arith.constant 0 : index
    %6 = vector.load %arg2[%c0_3, %c0_4, %c0_5] : memref<1x128x16xf32, #tpu.memory_space<vmem>>, vector<1x128x16xf32>
    %7 = vector.shape_cast %6 : vector<1x128x16xf32> to vector<128x16xf32>
    %c0_6 = arith.constant 0 : index
    %c0_7 = arith.constant 0 : index
    %8 = vector.load %arg4[%c0_6, %c0_7] : memref<16x896xf32, #tpu.memory_space<vmem>>, vector<16x896xf32>
    %cst_8 = arith.constant dense<0.000000e+00> : vector<128x896xf32>
    %9 = tpu.matmul %7, %8, %cst_8 {dimension_numbers = #tpu.dot_dimension_numbers<[1], [0], [0], [1], [0, 0, 1, 1], [], []>} : vector<128x16xf32>, vector<16x896xf32>, vector<128x896xf32> -> vector<128x896xf32>
    %10 = vector.extract_strided_slice %9 {offsets = [0, 0], sizes = [8, 896], strides = [1, 1]} : vector<128x896xf32> to vector<8x896xf32>
    %11 = arith.mulf %10, %3 : vector<8x896xf32>
    %12 = vector.extract_strided_slice %9 {offsets = [8, 0], sizes = [8, 896], strides = [1, 1]} : vector<128x896xf32> to vector<8x896xf32>
    %13 = arith.mulf %12, %4 : vector<8x896xf32>
    %14 = arith.addf %11, %13 : vector<8x896xf32>
    %15 = vector.extract_strided_slice %9 {offsets = [16, 0], sizes = [8, 896], strides = [1, 1]} : vector<128x896xf32> to vector<8x896xf32>
    %16 = arith.mulf %15, %5 : vector<8x896xf32>
    %17 = arith.addf %14, %16 : vector<8x896xf32>
    %18 = vector.extract_strided_slice %9 {offsets = [24, 0], sizes = [8, 896], strides = [1, 1]} : vector<128x896xf32> to vector<8x896xf32>
    %19 = arith.addf %17, %18 : vector<8x896xf32>
    %c0_9 = arith.constant 0 : index
    %c0_10 = arith.constant 0 : index
    %c0_11 = arith.constant 0 : index
    %20 = vector.load %arg5[%c0_9, %c0_10, %c0_11] : memref<3x8x896xf32, #tpu.memory_space<vmem>>, vector<1x8x896xf32>
    %21 = vector.shape_cast %20 : vector<1x8x896xf32> to vector<8x896xf32>
    %22 = vector.shape_cast %19 : vector<8x896xf32> to vector<1x8x896xf32>
    tpu.vector_store %arg5[%c0_9, %c0_10, %c0_11], %22 {strides = array<i32>} : memref<3x8x896xf32, #tpu.memory_space<vmem>>, vector<1x8x896xf32>,
    %23 = vector.extract_strided_slice %9 {offsets = [32, 0], sizes = [8, 896], strides = [1, 1]} : vector<128x896xf32> to vector<8x896xf32>
    %24 = arith.mulf %23, %3 : vector<8x896xf32>
    %25 = vector.extract_strided_slice %9 {offsets = [40, 0], sizes = [8, 896], strides = [1, 1]} : vector<128x896xf32> to vector<8x896xf32>
    %26 = arith.mulf %25, %4 : vector<8x896xf32>
    %27 = arith.addf %24, %26 : vector<8x896xf32>
    %28 = vector.extract_strided_slice %9 {offsets = [48, 0], sizes = [8, 896], strides = [1, 1]} : vector<128x896xf32> to vector<8x896xf32>
    %29 = arith.mulf %28, %5 : vector<8x896xf32>
    %30 = arith.addf %27, %29 : vector<8x896xf32>
    %31 = vector.extract_strided_slice %9 {offsets = [56, 0], sizes = [8, 896], strides = [1, 1]} : vector<128x896xf32> to vector<8x896xf32>
    %32 = arith.addf %30, %31 : vector<8x896xf32>
    %c1 = arith.constant 1 : index
    %c0_12 = arith.constant 0 : index
    %c0_13 = arith.constant 0 : index
    %33 = vector.load %arg5[%c1, %c0_12, %c0_13] : memref<3x8x896xf32, #tpu.memory_space<vmem>>, vector<1x8x896xf32>
    %34 = vector.shape_cast %33 : vector<1x8x896xf32> to vector<8x896xf32>
    %35 = vector.shape_cast %32 : vector<8x896xf32> to vector<1x8x896xf32>
    tpu.vector_store %arg5[%c1, %c0_12, %c0_13], %35 {strides = array<i32>} : memref<3x8x896xf32, #tpu.memory_space<vmem>>, vector<1x8x896xf32>,
    %36 = vector.extract_strided_slice %9 {offsets = [64, 0], sizes = [8, 896], strides = [1, 1]} : vector<128x896xf32> to vector<8x896xf32>
    %37 = arith.mulf %36, %3 : vector<8x896xf32>
    %38 = vector.extract_strided_slice %9 {offsets = [72, 0], sizes = [8, 896], strides = [1, 1]} : vector<128x896xf32> to vector<8x896xf32>
    %39 = arith.mulf %38, %4 : vector<8x896xf32>
    %40 = arith.addf %37, %39 : vector<8x896xf32>
    %41 = vector.extract_strided_slice %9 {offsets = [80, 0], sizes = [8, 896], strides = [1, 1]} : vector<128x896xf32> to vector<8x896xf32>
    %42 = arith.mulf %41, %5 : vector<8x896xf32>
    %43 = arith.addf %40, %42 : vector<8x896xf32>
    %44 = vector.extract_strided_slice %9 {offsets = [88, 0], sizes = [8, 896], strides = [1, 1]} : vector<128x896xf32> to vector<8x896xf32>
    %45 = arith.addf %43, %44 : vector<8x896xf32>
    %c2 = arith.constant 2 : index
    %c0_14 = arith.constant 0 : index
    %c0_15 = arith.constant 0 : index
    %46 = vector.load %arg5[%c2, %c0_14, %c0_15] : memref<3x8x896xf32, #tpu.memory_space<vmem>>, vector<1x8x896xf32>
    %47 = vector.shape_cast %46 : vector<1x8x896xf32> to vector<8x896xf32>
    %48 = vector.shape_cast %45 : vector<8x896xf32> to vector<1x8x896xf32>
    tpu.vector_store %arg5[%c2, %c0_14, %c0_15], %48 {strides = array<i32>} : memref<3x8x896xf32, #tpu.memory_space<vmem>>, vector<1x8x896xf32>,
    return
  }
  func.func @transform_0(%arg0: i32) -> (i32, i32) {
    %c0_i32 = arith.constant 0 : i32
    %c0_i32_0 = arith.constant 0 : i32
    return %arg0, %c0_i32 : i32, i32
  }
  func.func @transform_1(%arg0: i32) -> (i32, i32, i32) {
    %c0_i32 = arith.constant 0 : i32
    %c0_i32_0 = arith.constant 0 : i32
    %c0_i32_1 = arith.constant 0 : i32
    return %arg0, %c0_i32, %c0_i32_0 : i32, i32, i32
  }
  func.func @transform_2(%arg0: i32) -> (i32, i32) {
    %c0_i32 = arith.constant 0 : i32
    %c0_i32_0 = arith.constant 0 : i32
    %c0_i32_1 = arith.constant 0 : i32
    return %c0_i32, %c0_i32_0 : i32, i32
  }
  func.func @transform_3(%arg0: i32) -> (i32, i32) {
    %c0_i32 = arith.constant 0 : i32
    %c0_i32_0 = arith.constant 0 : i32
    %c0_i32_1 = arith.constant 0 : i32
    return %c0_i32, %c0_i32_0 : i32, i32
  }
  func.func @transform_4(%arg0: i32) -> (i32, i32, i32) {
    %c0_i32 = arith.constant 0 : i32
    %c0_i32_0 = arith.constant 0 : i32
    %c0_i32_1 = arith.constant 0 : i32
    return %c0_i32, %arg0, %c0_i32_0 : i32, i32, i32
  }
}

</mosaic_0001>

<bundles_post_ra>
// kernel: tpu_custom_call.1
= control target key start
LH: loop header
LB: loop body
LE: loop exit
PB: predicated region body
PF: predicated region fallthrough
CT: control target
= control target key end

     0   :  { %9 = vsyncpa [#allocation3], 0  ;;  %s2725_s0 = inlined_call_operand.hbm [shape: f32[8,136], index: 0, kind: input, shape index: {}]   ;;  %s2726_s1 = inlined_call_operand.vmem [shape: f32[1,128,16], index: 1, kind: input, shape index: {}]   ;;  %s2727_s2 = inlined_call_operand.hbm [shape: f32[136,2688], index: 2, kind: input, shape index: {}]   ;;  %s2728_s3 = inlined_call_operand.hbm [shape: f32[16,896], index: 3, kind: input, shape index: {}]   ;;  %s2729_s4 = inlined_call_operand.hbm [shape: f32[3,8,896], index: 4, kind: output, shape index: {}]  }
   0x1   :  { %10 = vsyncpa [#allocation6], 0 }
   0x2   :  { %11 = vsyncpa [#allocation4], 0  ;;  %s2264_s15 = smov [#allocation5]  }
   0x3   :  { %s29_s16 = sshll.u32 %s2264_s15, 4  ;;  %s30_s16 = int_to_ptr.vmem [resolvable:$true] %s29_s16 }
   0x4   :  { %s2186_s17 = scalar_lea.vmem %s30_s16, 45696  ;;  %p2191_p1 = scmp.lt.s32.totalorder %s30_s16, %s30_s16 }
   0x5   :  { %p2187_p0 = scmp.ne.s32.totalorder %s30_s16, %s2186_s17  ;;  %p2192_p2 = scmp.lt.s32.totalorder %s2186_s17, %s2186_s17 }
   0x7   :  { %p2193_p3 = por %p2192_p2, %p2191_p1 }
   0x9   :  { %p2194_p4 = pnand %p2193_p3, %p2187_p0 }
   0xb   :  { %2197 = shalt.err (!%p2194_p4)
}
   0xc   :  { %s2265_s18 = smov 2688   ;;  %s2266_s19 = smov 168  }
   0xd   :  { %35 = dma.hbm_to_vmem [thread:$0]  %s2727_s2, 45696, %s30_s16, [#allocation6], %s2265_s18, %s2265_s18, %s2266_s19  }
   0xe   :  { %s2267_s22 = smov [#allocation2]   ;;  %s2268_s24 = smov [#allocation7]  }
   0xf   :  { %s18_s23 = sshll.u32 %s2267_s22, 4  ;;  %s41_s25 = sshll.u32 %s2268_s24, 4  ;;  %s19_s23 = int_to_ptr.vmem [resolvable:$true] %s18_s23  ;;  %s42_s25 = int_to_ptr.vmem [resolvable:$true] %s41_s25 }
  0x10   :  { %s2206_s26 = scalar_lea.vmem %s19_s23, 256  ;;  %p2211_p6 = scmp.lt.s32.totalorder %s19_s23, %s19_s23 }
  0x11   :  { %p2207_p5 = scmp.ne.s32.totalorder %s19_s23, %s2206_s26  ;;  %p2212_p7 = scmp.lt.s32.totalorder %s2206_s26, %s2206_s26 }
  0x13   :  { %p2213_p8 = por %p2212_p7, %p2211_p6 }
  0x15   :  { %p2214_p9 = pnand %p2213_p8, %p2207_p5 }
  0x17   :  { %2217 = shalt.err (!%p2214_p9)
}
  0x18   :  { %21 = dma.hbm_to_vmem [thread:$0]  %s2725_s0, 256, %s19_s23, [#allocation3]  }
  0x19   :  { %s2226_s29 = scalar_lea.vmem %s42_s25, 1792  ;;  %p2231_p11 = scmp.lt.s32.totalorder %s42_s25, %s42_s25 }
  0x1a   :  { %p2227_p10 = scmp.ne.s32.totalorder %s42_s25, %s2226_s29  ;;  %p2232_p12 = scmp.lt.s32.totalorder %s2226_s29, %s2226_s29 }
  0x1c   :  { %p2233_p13 = por %p2232_p12, %p2231_p11 }
  0x1e   :  { %p2234_p0 = pnand %p2233_p13, %p2227_p10 }
  0x20   :  { %2237 = shalt.err (!%p2234_p0)
}
  0x21   :  { %s2269_s2 = smov 896   ;;  %s2270_s30 = smov 56  }
  0x22   :  { %47 = dma.hbm_to_vmem [thread:$0]  %s2728_s3, 1792, %s42_s25, [#allocation6], %s2269_s2, %s2269_s2, %s2270_s30  }
  0x23   :  { %2258 = dma.done.wait [#allocation3], 256  }
  0x24   :  { %2259 = vsyncadd [#allocation3], 4294967040 }
  0x25   :  { %2260 = dma.done.wait [#allocation6], 47488  }
  0x26   :  { %2261 = vsyncadd [#allocation6], 4294919808  ;;  %v375_v0 = vld [vmem:[#allocation5 + $0x9e0] sm:$0xff]  ;;  %v377_v1 = vld [vmem:[#allocation5 + $0x9f0] sm:$0xff]  ;;  %vm416_vm0 = vcmask 64512   ;;  %vm1230_vm1 = vcmask 130048  }
  0x27   :  { %v374_v2 = vld [vmem:[#allocation5 + $0x9d8] sm:$0xff]  ;;  %420 = vmatprep.subr.mxu0 %v375_v0  ;;  %491 = vmatprep.subr.mxu1 %v377_v1  ;;  %v376_v3 = vld [vmem:[#allocation5 + $0x9e8] sm:$0xff]  ;;  %v353_v6 = vld [vmem:[#allocation5 + $0x930] sm:$0xff] }
  0x28   :  { %v354_v4 = vld [vmem:[#allocation5 + $0x938] sm:$0xff]  ;;  %v356_v5 = vld [vmem:[#allocation5 + $0x948] sm:$0xff]  ;;  %421 = vmatpush1.msra.mxu0 %v374_v2  ;;  %492 = vmatpush1.msra.mxu1 %v376_v3  ;;  %v355_v7 = vld [vmem:[#allocation5 + $0x940] sm:$0xff] }
  0x29   :  { %v333_v8 = vld [vmem:[#allocation5 + $0x890] sm:$0xff]  ;;  %422 = vmatprep.subr.mxu0 %v354_v4  ;;  %493 = vmatprep.subr.mxu1 %v356_v5  ;;  %v335_v9 = vld [vmem:[#allocation5 + $0x8a0] sm:$0xff]  ;;  %v332_v10 = vld [vmem:[#allocation5 + $0x888] sm:$0xff] }
  0x2a   :  { %v334_v11 = vld [vmem:[#allocation5 + $0x898] sm:$0xff]  ;;  %423 = vmatpush1.msra.mxu0 %v353_v6  ;;  %494 = vmatpush1.msra.mxu1 %v355_v7  ;;  %v312_v12 = vld [vmem:[#allocation5 + $0x7e8] sm:$0xff]  ;;  %v311_v14 = vld [vmem:[#allocation5 + $0x7e0] sm:$0xff] }
  0x2b   :  { %v314_v13 = vld [vmem:[#allocation5 + $0x7f8] sm:$0xff]  ;;  %424 = vmatprep.subr.mxu0 %v333_v8  ;;  %495 = vmatprep.subr.mxu1 %v335_v9  ;;  %v313_v15 = vld [vmem:[#allocation5 + $0x7f0] sm:$0xff]  ;;  %v291_v16 = vld [vmem:[#allocation5 + $0x740] sm:$0xff] }
  0x2c   :  { %425 = vmatpush1.msra.mxu0 %v332_v10  ;;  %496 = vmatpush1.msra.mxu1 %v334_v11  ;;  %v293_v17 = vld [vmem:[#allocation5 + $0x750] sm:$0xff]  ;;  %v290_v18 = vld [vmem:[#allocation5 + $0x738] sm:$0xff]  ;;  %v292_v19 = vld [vmem:[#allocation5 + $0x748] sm:$0xff] }
  0x2d   :  { %426 = vmatprep.subr.mxu0 %v312_v12  ;;  %497 = vmatprep.subr.mxu1 %v314_v13  ;;  %v270_v20 = vld [vmem:[#allocation5 + $0x698] sm:$0xff]  ;;  %v272_v21 = vld [vmem:[#allocation5 + $0x6a8] sm:$0xff]  ;;  %v269_v22 = vld [vmem:[#allocation5 + $0x690] sm:$0xff] }
  0x2e   :  { %427 = vmatpush1.msra.mxu0 %v311_v14  ;;  %498 = vmatpush1.msra.mxu1 %v313_v15  ;;  %v271_v23 = vld [vmem:[#allocation5 + $0x6a0] sm:$0xff]  ;;  %v249_v24 = vld [vmem:[#allocation5 + $0x5f0] sm:$0xff]  ;;  %v248_v26 = vld [vmem:[#allocation5 + $0x5e8] sm:$0xff] }
  0x2f   :  { %428 = vmatprep.subr.mxu0 %v291_v16  ;;  %499 = vmatprep.subr.mxu1 %v293_v17  ;;  %v251_v25 = vld [vmem:[#allocation5 + $0x600] sm:$0xff]  ;;  %v250_v27 = vld [vmem:[#allocation5 + $0x5f8] sm:$0xff]  ;;  %v228_v28 = vld [vmem:[#allocation5 + $0x548] sm:$0xff] }
  0x30   :  { %429 = vmatpush1.msra.mxu0 %v290_v18  ;;  %500 = vmatpush1.msra.mxu1 %v292_v19  ;;  %v230_v29 = vld [vmem:[#allocation5 + $0x558] sm:$0xff]  ;;  %v227_v30 = vld [vmem:[#allocation5 + $0x540] sm:$0xff]  ;;  %v229_v31 = vld [vmem:[#allocation5 + $0x550] sm:$0xff] }
  0x31   :  { %430 = vmatprep.subr.mxu0 %v270_v20  ;;  %501 = vmatprep.subr.mxu1 %v272_v21  ;;  %v207_v32 = vld [vmem:[#allocation5 + $0x4a0] sm:$0xff]  ;;  %v209_v33 = vld [vmem:[#allocation5 + $0x4b0] sm:$0xff]  ;;  %v206_v34 = vld [vmem:[#allocation5 + $0x498] sm:$0xff] }
  0x32   :  { %431 = vmatpush1.msra.mxu0 %v269_v22  ;;  %502 = vmatpush1.msra.mxu1 %v271_v23  ;;  %v208_v35 = vld [vmem:[#allocation5 + $0x4a8] sm:$0xff]  ;;  %v186_v36 = vld [vmem:[#allocation5 + $0x3f8] sm:$0xff]  ;;  %v185_v38 = vld [vmem:[#allocation5 + $0x3f0] sm:$0xff] }
  0x33   :  { %432 = vmatprep.subr.mxu0 %v249_v24  ;;  %503 = vmatprep.subr.mxu1 %v251_v25  ;;  %v188_v37 = vld [vmem:[#allocation5 + $0x408] sm:$0xff]  ;;  %v187_v39 = vld [vmem:[#allocation5 + $0x400] sm:$0xff]  ;;  %v165_v40 = vld [vmem:[#allocation5 + $0x350] sm:$0xff] }
  0x34   :  { %433 = vmatpush1.msra.mxu0 %v248_v26  ;;  %504 = vmatpush1.msra.mxu1 %v250_v27  ;;  %v167_v41 = vld [vmem:[#allocation5 + $0x360] sm:$0xff]  ;;  %v164_v42 = vld [vmem:[#allocation5 + $0x348] sm:$0xff]  ;;  %v166_v43 = vld [vmem:[#allocation5 + $0x358] sm:$0xff] }
  0x35   :  { %434 = vmatprep.subr.mxu0 %v228_v28  ;;  %505 = vmatprep.subr.mxu1 %v230_v29  ;;  %v144_v44 = vld [vmem:[#allocation5 + $0x2a8] sm:$0xff]  ;;  %v146_v45 = vld [vmem:[#allocation5 + $0x2b8] sm:$0xff]  ;;  %v143_v46 = vld [vmem:[#allocation5 + $0x2a0] sm:$0xff] }
  0x36   :  { %435 = vmatpush1.msra.mxu0 %v227_v30  ;;  %506 = vmatpush1.msra.mxu1 %v229_v31  ;;  %v145_v47 = vld [vmem:[#allocation5 + $0x2b0] sm:$0xff]  ;;  %v123_v48 = vld [vmem:[#allocation5 + $0x200] sm:$0xff]  ;;  %v122_v50 = vld [vmem:[#allocation5 + $0x1f8] sm:$0xff] }
  0x37   :  { %436 = vmatprep.subr.mxu0 %v207_v32  ;;  %507 = vmatprep.subr.mxu1 %v209_v33  ;;  %v125_v49 = vld [vmem:[#allocation5 + $0x210] sm:$0xff]  ;;  %v124_v51 = vld [vmem:[#allocation5 + $0x208] sm:$0xff]  ;;  %v102_v52 = vld [vmem:[#allocation5 + $0x158] sm:$0xff] }
  0x38   :  { %437 = vmatpush1.msra.mxu0 %v206_v34  ;;  %508 = vmatpush1.msra.mxu1 %v208_v35  ;;  %v104_v53 = vld [vmem:[#allocation5 + $0x168] sm:$0xff]  ;;  %v101_v54 = vld [vmem:[#allocation5 + $0x150] sm:$0xff]  ;;  %v103_v55 = vld [vmem:[#allocation5 + $0x160] sm:$0xff] }
  0x39   :  { %438 = vmatprep.subr.mxu0 %v186_v36  ;;  %509 = vmatprep.subr.mxu1 %v188_v37  ;;  %v81_v56 = vld [vmem:[#allocation5 + $0xb0] sm:$0xff]  ;;  %v83_v57 = vld [vmem:[#allocation5 + $0xc0] sm:$0xff]  ;;  %v80_v58 = vld [vmem:[#allocation5 + $0xa8] sm:$0xff] }
  0x3a   :  { %439 = vmatpush1.msra.mxu0 %v185_v38  ;;  %510 = vmatpush1.msra.mxu1 %v187_v39  ;;  %v82_v59 = vld [vmem:[#allocation5 + $0xb8] sm:$0xff]  ;;  %v60_v60 = vld [vmem:[#allocation5 + $0x8] sm:$0xff]  ;;  %v59_v62 = vld [vmem:[#allocation5] sm:$0xff] }
  0x3b   :  { %440 = vmatprep.subr.mxu0 %v165_v40  ;;  %511 = vmatprep.subr.mxu1 %v167_v41  ;;  %v62_v61 = vld [vmem:[#allocation5 + $0x18] sm:$0xff]  ;;  %v61_v63 = vld [vmem:[#allocation5 + $0x10] sm:$0xff]  ;;  %v396_v0 = vld [vmem:[#allocation5 + $0xa88] sm:$0xff] }
  0x3c   :  { %441 = vmatpush1.msra.mxu0 %v164_v42  ;;  %512 = vmatpush1.msra.mxu1 %v166_v43  ;;  %v398_v1 = vld [vmem:[#allocation5 + $0xa98] sm:$0xff]  ;;  %v395_v2 = vld [vmem:[#allocation5 + $0xa80] sm:$0xff]  ;;  %v397_v4 = vld [vmem:[#allocation5 + $0xa90] sm:$0xff] }
  0x3d   :  { %442 = vmatprep.subr.mxu0 %v144_v44  ;;  %513 = vmatprep.subr.mxu1 %v146_v45  ;;  %v2310_v3 = vld [vmem:[#allocation2 + $0x8] sm:$0xff]  ;;  %v2312_v5 = vld [vmem:[#allocation2] sm:$0xff]  ;;  %v379_v6 = vld [vmem:[#allocation5 + $0xa00] sm:$0xff] }
  0x3e   :  { %443 = vmatpush1.msra.mxu0 %v143_v46  ;;  %514 = vmatpush1.msra.mxu1 %v145_v47  ;;  %v381_v7 = vld [vmem:[#allocation5 + $0xa10] sm:$0xff]  ;;  %v378_v8 = vld [vmem:[#allocation5 + $0x9f8] sm:$0xff]  ;;  %v380_v9 = vld [vmem:[#allocation5 + $0xa08] sm:$0xff] }
  0x3f   :  { %444 = vmatprep.subr.mxu0 %v123_v48  ;;  %515 = vmatprep.subr.mxu1 %v125_v49  ;;  %v358_v10 = vld [vmem:[#allocation5 + $0x958] sm:$0xff]  ;;  %v360_v11 = vld [vmem:[#allocation5 + $0x968] sm:$0xff]  ;;  %v357_v12 = vld [vmem:[#allocation5 + $0x950] sm:$0xff] }
  0x40   :  { %445 = vmatpush1.msra.mxu0 %v122_v50  ;;  %516 = vmatpush1.msra.mxu1 %v124_v51  ;;  %v359_v13 = vld [vmem:[#allocation5 + $0x960] sm:$0xff]  ;;  %v337_v14 = vld [vmem:[#allocation5 + $0x8b0] sm:$0xff]  ;;  %v336_v16 = vld [vmem:[#allocation5 + $0x8a8] sm:$0xff] }
  0x41   :  { %446 = vmatprep.subr.mxu0 %v102_v52  ;;  %517 = vmatprep.subr.mxu1 %v104_v53  ;;  %v339_v15 = vld [vmem:[#allocation5 + $0x8c0] sm:$0xff]  ;;  %v338_v17 = vld [vmem:[#allocation5 + $0x8b8] sm:$0xff]  ;;  %v316_v18 = vld [vmem:[#allocation5 + $0x808] sm:$0xff] }
  0x42   :  { %447 = vmatpush1.msra.mxu0 %v101_v54  ;;  %518 = vmatpush1.msra.mxu1 %v103_v55  ;;  %v318_v19 = vld [vmem:[#allocation5 + $0x818] sm:$0xff]  ;;  %v315_v20 = vld [vmem:[#allocation5 + $0x800] sm:$0xff]  ;;  %v317_v21 = vld [vmem:[#allocation5 + $0x810] sm:$0xff] }
  0x43   :  { %448 = vmatprep.subr.mxu0 %v81_v56  ;;  %519 = vmatprep.subr.mxu1 %v83_v57  ;;  %v295_v22 = vld [vmem:[#allocation5 + $0x760] sm:$0xff]  ;;  %v297_v23 = vld [vmem:[#allocation5 + $0x770] sm:$0xff]  ;;  %v294_v24 = vld [vmem:[#allocation5 + $0x758] sm:$0xff] }
  0x44   :  { %449 = vmatpush1.msra.mxu0 %v80_v58  ;;  %520 = vmatpush1.msra.mxu1 %v82_v59  ;;  %v296_v25 = vld [vmem:[#allocation5 + $0x768] sm:$0xff]  ;;  %v274_v26 = vld [vmem:[#allocation5 + $0x6b8] sm:$0xff]  ;;  %v273_v28 = vld [vmem:[#allocation5 + $0x6b0] sm:$0xff] }
  0x45   :  { %450 = vmatprep.subr.mxu0 %v60_v60  ;;  %521 = vmatprep.subr.mxu1 %v62_v61  ;;  %v276_v27 = vld [vmem:[#allocation5 + $0x6c8] sm:$0xff]  ;;  %v275_v29 = vld [vmem:[#allocation5 + $0x6c0] sm:$0xff]  ;;  %v253_v30 = vld [vmem:[#allocation5 + $0x610] sm:$0xff] }
  0x46   :  { %451 = vmatpush1.msra.mxu0 %v59_v62  ;;  %522 = vmatpush1.msra.mxu1 %v61_v63  ;;  %v255_v31 = vld [vmem:[#allocation5 + $0x620] sm:$0xff]  ;;  %v252_v32 = vld [vmem:[#allocation5 + $0x608] sm:$0xff]  ;;  %v254_v33 = vld [vmem:[#allocation5 + $0x618] sm:$0xff] }
  0x47   :  { %482 = vmatprep.subr.mxu0 %v396_v0  ;;  %553 = vmatprep.subr.mxu1 %v398_v1  ;;  %v232_v34 = vld [vmem:[#allocation5 + $0x568] sm:$0xff]  ;;  %v234_v35 = vld [vmem:[#allocation5 + $0x578] sm:$0xff]  ;;  %v231_v36 = vld [vmem:[#allocation5 + $0x560] sm:$0xff] }
  0x48   :  { %483 = vmatpush2.msra.mxu0 %v395_v2  ;;  %2046 = vmatprep.mubr.msk.f32.mxu0 %vm416_vm0, %v2310_v3  ;;  %v233_v37 = vld [vmem:[#allocation5 + $0x570] sm:$0xff]  ;;  %v211_v38 = vld [vmem:[#allocation5 + $0x4c0] sm:$0xff]  ;;  %v210_v40 = vld [vmem:[#allocation5 + $0x4b8] sm:$0xff] }
  0x49   :  { %554 = vmatpush2.msra.mxu1 %v397_v4  ;;  %485 = vmatmul.mubr.f32.vlgmr.msra.gmra.mxu0 %v2312_v5  ;;  %v213_v39 = vld [vmem:[#allocation5 + $0x4d0] sm:$0xff]  ;;  %v212_v41 = vld [vmem:[#allocation5 + $0x4c8] sm:$0xff]  ;;  %v190_v42 = vld [vmem:[#allocation5 + $0x418] sm:$0xff] }
  0x4a   :  { %2047 = vmatprep.mubr.msk.f32.mxu1 %vm416_vm0, %v2310_v3  ;;  %562 = vmatprep.subr.mxu0 %v379_v6  ;;  %v192_v43 = vld [vmem:[#allocation5 + $0x428] sm:$0xff]  ;;  %v189_v44 = vld [vmem:[#allocation5 + $0x410] sm:$0xff]  ;;  %v191_v45 = vld [vmem:[#allocation5 + $0x420] sm:$0xff] }
  0x4b   :  { %633 = vmatprep.subr.mxu1 %v381_v7  ;;  %556 = vmatmul.mubr.f32.vlgmr.msra.gmra.mxu1 %v2312_v5  ;;  %v169_v46 = vld [vmem:[#allocation5 + $0x370] sm:$0xff]  ;;  %v171_v47 = vld [vmem:[#allocation5 + $0x380] sm:$0xff]  ;;  %v168_v48 = vld [vmem:[#allocation5 + $0x368] sm:$0xff] }
  0x4c   :  { %563 = vmatpush1.msra.mxu0 %v378_v8  ;;  %634 = vmatpush1.msra.mxu1 %v380_v9  ;;  %v170_v49 = vld [vmem:[#allocation5 + $0x378] sm:$0xff]  ;;  %v148_v50 = vld [vmem:[#allocation5 + $0x2c8] sm:$0xff]  ;;  %v147_v52 = vld [vmem:[#allocation5 + $0x2c0] sm:$0xff] }
  0x4d   :  { %564 = vmatprep.subr.mxu0 %v358_v10  ;;  %635 = vmatprep.subr.mxu1 %v360_v11  ;;  %v150_v51 = vld [vmem:[#allocation5 + $0x2d8] sm:$0xff]  ;;  %v149_v53 = vld [vmem:[#allocation5 + $0x2d0] sm:$0xff]  ;;  %v127_v54 = vld [vmem:[#allocation5 + $0x220] sm:$0xff] }
  0x4e   :  { %565 = vmatpush1.msra.mxu0 %v357_v12  ;;  %636 = vmatpush1.msra.mxu1 %v359_v13  ;;  %v129_v55 = vld [vmem:[#allocation5 + $0x230] sm:$0xff]  ;;  %v126_v56 = vld [vmem:[#allocation5 + $0x218] sm:$0xff]  ;;  %v128_v57 = vld [vmem:[#allocation5 + $0x228] sm:$0xff] }
  0x4f   :  { %566 = vmatprep.subr.mxu0 %v337_v14  ;;  %637 = vmatprep.subr.mxu1 %v339_v15  ;;  %v106_v58 = vld [vmem:[#allocation5 + $0x178] sm:$0xff]  ;;  %v108_v59 = vld [vmem:[#allocation5 + $0x188] sm:$0xff]  ;;  %v105_v60 = vld [vmem:[#allocation5 + $0x170] sm:$0xff] }
  0x50   :  { %567 = vmatpush1.msra.mxu0 %v336_v16  ;;  %638 = vmatpush1.msra.mxu1 %v338_v17  ;;  %v107_v61 = vld [vmem:[#allocation5 + $0x180] sm:$0xff]  ;;  %v85_v62 = vld [vmem:[#allocation5 + $0xd0] sm:$0xff]  ;;  %v84_v0 = vld [vmem:[#allocation5 + $0xc8] sm:$0xff] }
  0x51   :  { %568 = vmatprep.subr.mxu0 %v316_v18  ;;  %639 = vmatprep.subr.mxu1 %v318_v19  ;;  %v87_v63 = vld [vmem:[#allocation5 + $0xe0] sm:$0xff]  ;;  %v86_v1 = vld [vmem:[#allocation5 + $0xd8] sm:$0xff]  ;;  %v64_v2 = vld [vmem:[#allocation5 + $0x28] sm:$0xff] }
  0x52   :  { %569 = vmatpush1.msra.mxu0 %v315_v20  ;;  %640 = vmatpush1.msra.mxu1 %v317_v21  ;;  %v66_v4 = vld [vmem:[#allocation5 + $0x38] sm:$0xff]  ;;  %v63_v6 = vld [vmem:[#allocation5 + $0x20] sm:$0xff]  ;;  %v65_v7 = vld [vmem:[#allocation5 + $0x30] sm:$0xff] }
  0x53   :  { %570 = vmatprep.subr.mxu0 %v295_v22  ;;  %641 = vmatprep.subr.mxu1 %v297_v23  ;;  %v400_v8 = vld [vmem:[#allocation5 + $0xaa8] sm:$0xff]  ;;  %v402_v9 = vld [vmem:[#allocation5 + $0xab8] sm:$0xff]  ;;  %v399_v10 = vld [vmem:[#allocation5 + $0xaa0] sm:$0xff] }
  0x54   :  { %571 = vmatpush1.msra.mxu0 %v294_v24  ;;  %642 = vmatpush1.msra.mxu1 %v296_v25  ;;  %v401_v11 = vld [vmem:[#allocation5 + $0xab0] sm:$0xff]  ;;  %v383_v12 = vld [vmem:[#allocation5 + $0xa20] sm:$0xff]  ;;  %v382_v14 = vld [vmem:[#allocation5 + $0xa18] sm:$0xff] }
  0x55   :  { %572 = vmatprep.subr.mxu0 %v274_v26  ;;  %643 = vmatprep.subr.mxu1 %v276_v27  ;;  %v385_v13 = vld [vmem:[#allocation5 + $0xa30] sm:$0xff]  ;;  %v384_v15 = vld [vmem:[#allocation5 + $0xa28] sm:$0xff]  ;;  %v362_v16 = vld [vmem:[#allocation5 + $0x978] sm:$0xff] }
  0x56   :  { %573 = vmatpush1.msra.mxu0 %v273_v28  ;;  %644 = vmatpush1.msra.mxu1 %v275_v29  ;;  %v364_v17 = vld [vmem:[#allocation5 + $0x988] sm:$0xff]  ;;  %v361_v18 = vld [vmem:[#allocation5 + $0x970] sm:$0xff]  ;;  %v363_v19 = vld [vmem:[#allocation5 + $0x980] sm:$0xff] }
  0x57   :  { %574 = vmatprep.subr.mxu0 %v253_v30  ;;  %645 = vmatprep.subr.mxu1 %v255_v31  ;;  %v341_v20 = vld [vmem:[#allocation5 + $0x8d0] sm:$0xff]  ;;  %v343_v21 = vld [vmem:[#allocation5 + $0x8e0] sm:$0xff]  ;;  %v340_v22 = vld [vmem:[#allocation5 + $0x8c8] sm:$0xff] }
  0x58   :  { %575 = vmatpush1.msra.mxu0 %v252_v32  ;;  %646 = vmatpush1.msra.mxu1 %v254_v33  ;;  %v342_v23 = vld [vmem:[#allocation5 + $0x8d8] sm:$0xff]  ;;  %v320_v24 = vld [vmem:[#allocation5 + $0x828] sm:$0xff]  ;;  %v319_v26 = vld [vmem:[#allocation5 + $0x820] sm:$0xff] }
  0x59   :  { %576 = vmatprep.subr.mxu0 %v232_v34  ;;  %647 = vmatprep.subr.mxu1 %v234_v35  ;;  %v322_v25 = vld [vmem:[#allocation5 + $0x838] sm:$0xff]  ;;  %v321_v27 = vld [vmem:[#allocation5 + $0x830] sm:$0xff]  ;;  %v299_v28 = vld [vmem:[#allocation5 + $0x780] sm:$0xff] }
  0x5a   :  { %577 = vmatpush1.msra.mxu0 %v231_v36  ;;  %648 = vmatpush1.msra.mxu1 %v233_v37  ;;  %v301_v29 = vld [vmem:[#allocation5 + $0x790] sm:$0xff]  ;;  %v298_v30 = vld [vmem:[#allocation5 + $0x778] sm:$0xff]  ;;  %v300_v31 = vld [vmem:[#allocation5 + $0x788] sm:$0xff] }
  0x5b   :  { %578 = vmatprep.subr.mxu0 %v211_v38  ;;  %649 = vmatprep.subr.mxu1 %v213_v39  ;;  %v278_v32 = vld [vmem:[#allocation5 + $0x6d8] sm:$0xff]  ;;  %v280_v33 = vld [vmem:[#allocation5 + $0x6e8] sm:$0xff]  ;;  %v277_v34 = vld [vmem:[#allocation5 + $0x6d0] sm:$0xff] }
  0x5c   :  { %579 = vmatpush1.msra.mxu0 %v210_v40  ;;  %650 = vmatpush1.msra.mxu1 %v212_v41  ;;  %v279_v35 = vld [vmem:[#allocation5 + $0x6e0] sm:$0xff]  ;;  %v257_v36 = vld [vmem:[#allocation5 + $0x630] sm:$0xff]  ;;  %v256_v38 = vld [vmem:[#allocation5 + $0x628] sm:$0xff] }
  0x5d   :  { %580 = vmatprep.subr.mxu0 %v190_v42  ;;  %651 = vmatprep.subr.mxu1 %v192_v43  ;;  %v259_v37 = vld [vmem:[#allocation5 + $0x640] sm:$0xff]  ;;  %v258_v39 = vld [vmem:[#allocation5 + $0x638] sm:$0xff]  ;;  %v236_v40 = vld [vmem:[#allocation5 + $0x588] sm:$0xff] }
  0x5e   :  { %581 = vmatpush1.msra.mxu0 %v189_v44  ;;  %652 = vmatpush1.msra.mxu1 %v191_v45  ;;  %v238_v41 = vld [vmem:[#allocation5 + $0x598] sm:$0xff]  ;;  %v235_v42 = vld [vmem:[#allocation5 + $0x580] sm:$0xff]  ;;  %v237_v43 = vld [vmem:[#allocation5 + $0x590] sm:$0xff] }
  0x5f   :  { %582 = vmatprep.subr.mxu0 %v169_v46  ;;  %653 = vmatprep.subr.mxu1 %v171_v47  ;;  %v215_v44 = vld [vmem:[#allocation5 + $0x4e0] sm:$0xff]  ;;  %v217_v45 = vld [vmem:[#allocation5 + $0x4f0] sm:$0xff]  ;;  %v214_v46 = vld [vmem:[#allocation5 + $0x4d8] sm:$0xff] }
  0x60   :  { %583 = vmatpush1.msra.mxu0 %v168_v48  ;;  %654 = vmatpush1.msra.mxu1 %v170_v49  ;;  %v216_v47 = vld [vmem:[#allocation5 + $0x4e8] sm:$0xff]  ;;  %v194_v48 = vld [vmem:[#allocation5 + $0x438] sm:$0xff] }
  0x61   :  { %584 = vmatprep.subr.mxu0 %v148_v50  ;;  %655 = vmatprep.subr.mxu1 %v150_v51  ;;  %v196_v49 = vld [vmem:[#allocation5 + $0x448] sm:$0xff]  ;;  %v193_v50 = vld [vmem:[#allocation5 + $0x430] sm:$0xff]  ;;  %v195_v51 = vld [vmem:[#allocation5 + $0x440] sm:$0xff] }
  0x62   :  { %585 = vmatpush1.msra.mxu0 %v147_v52  ;;  %656 = vmatpush1.msra.mxu1 %v149_v53  ;;  %v173_v52 = vld [vmem:[#allocation5 + $0x390] sm:$0xff]  ;;  %v175_v53 = vld [vmem:[#allocation5 + $0x3a0] sm:$0xff] }
  0x63   :  { %586 = vmatprep.subr.mxu0 %v127_v54  ;;  %657 = vmatprep.subr.mxu1 %v129_v55  ;;  %v172_v54 = vld [vmem:[#allocation5 + $0x388] sm:$0xff]  ;;  %v174_v55 = vld [vmem:[#allocation5 + $0x398] sm:$0xff] }
  0x64   :  { %587 = vmatpush1.msra.mxu0 %v126_v56  ;;  %658 = vmatpush1.msra.mxu1 %v128_v57  ;;  %v152_v56 = vld [vmem:[#allocation5 + $0x2e8] sm:$0xff]  ;;  %v154_v57 = vld [vmem:[#allocation5 + $0x2f8] sm:$0xff] }
  0x65   :  { %588 = vmatprep.subr.mxu0 %v106_v58  ;;  %659 = vmatprep.subr.mxu1 %v108_v59  ;;  %v151_v58 = vld [vmem:[#allocation5 + $0x2e0] sm:$0xff]  ;;  %v153_v59 = vld [vmem:[#allocation5 + $0x2f0] sm:$0xff] }
  0x66   :  { %589 = vmatpush1.msra.mxu0 %v105_v60  ;;  %660 = vmatpush1.msra.mxu1 %v107_v61  ;;  %v131_v60 = vld [vmem:[#allocation5 + $0x240] sm:$0xff]  ;;  %v133_v61 = vld [vmem:[#allocation5 + $0x250] sm:$0xff] }
  0x67   :  { %590 = vmatprep.subr.mxu0 %v85_v62  ;;  %661 = vmatprep.subr.mxu1 %v87_v63  ;;  %v130_v62 = vld [vmem:[#allocation5 + $0x238] sm:$0xff]  ;;  %v132_v63 = vld [vmem:[#allocation5 + $0x248] sm:$0xff] }
  0x68   :  { %591 = vmatpush1.msra.mxu0 %v84_v0  ;;  %662 = vmatpush1.msra.mxu1 %v86_v1  ;;  %v110_v0 = vld [vmem:[#allocation5 + $0x198] sm:$0xff]  ;;  %v112_v1 = vld [vmem:[#allocation5 + $0x1a8] sm:$0xff] }
  0x69   :  { %592 = vmatprep.subr.mxu0 %v64_v2  ;;  %663 = vmatprep.subr.mxu1 %v66_v4  ;;  %v109_v2 = vld [vmem:[#allocation5 + $0x190] sm:$0xff]  ;;  %v111_v4 = vld [vmem:[#allocation5 + $0x1a0] sm:$0xff] }
  0x6a   :  { %593 = vmatpush1.msra.mxu0 %v63_v6  ;;  %664 = vmatpush1.msra.mxu1 %v65_v7  ;;  %v89_v6 = vld [vmem:[#allocation5 + $0xf0] sm:$0xff]  ;;  %v91_v7 = vld [vmem:[#allocation5 + $0x100] sm:$0xff] }
  0x6b   :  { %624 = vmatprep.subr.mxu0 %v400_v8  ;;  %695 = vmatprep.subr.mxu1 %v402_v9  ;;  %v88_v8 = vld [vmem:[#allocation5 + $0xe8] sm:$0xff]  ;;  %v90_v9 = vld [vmem:[#allocation5 + $0xf8] sm:$0xff] }
  0x6c   :  { %625 = vmatpush2.msra.mxu0 %v399_v10  ;;  %2048 = vmatprep.mubr.msk.f32.mxu0 %vm416_vm0, %v2310_v3  ;;  %v68_v10 = vld [vmem:[#allocation5 + $0x48] sm:$0xff] }
  0x6d   :  { %696 = vmatpush2.msra.mxu1 %v401_v11  ;;  %627 = vmatmul.mubr.f32.vlgmr.msra.gmra.mxu0 %v2312_v5  ;;  %v70_v11 = vld [vmem:[#allocation5 + $0x58] sm:$0xff] }
  0x6e   :  { %2049 = vmatprep.mubr.msk.f32.mxu1 %vm416_vm0, %v2310_v3  ;;  %704 = vmatprep.subr.mxu0 %v383_v12  ;;  %v67_v12 = vld [vmem:[#allocation5 + $0x40] sm:$0xff] }
  0x6f   :  { %775 = vmatprep.subr.mxu1 %v385_v13  ;;  %698 = vmatmul.mubr.f32.vlgmr.msra.gmra.mxu1 %v2312_v5  ;;  %v69_v13 = vld [vmem:[#allocation5 + $0x50] sm:$0xff] }
  0x70   :  { %705 = vmatpush1.msra.mxu0 %v382_v14  ;;  %776 = vmatpush1.msra.mxu1 %v384_v15  ;;  %v404_v14 = vld [vmem:[#allocation5 + $0xac8] sm:$0xff]  ;;  %v406_v15 = vld [vmem:[#allocation5 + $0xad8] sm:$0xff] }
  0x71   :  { %706 = vmatprep.subr.mxu0 %v362_v16  ;;  %777 = vmatprep.subr.mxu1 %v364_v17  ;;  %v403_v16 = vld [vmem:[#allocation5 + $0xac0] sm:$0xff]  ;;  %v405_v17 = vld [vmem:[#allocation5 + $0xad0] sm:$0xff] }
  0x72   :  { %707 = vmatpush1.msra.mxu0 %v361_v18  ;;  %778 = vmatpush1.msra.mxu1 %v363_v19  ;;  %v387_v18 = vld [vmem:[#allocation5 + $0xa40] sm:$0xff]  ;;  %v389_v19 = vld [vmem:[#allocation5 + $0xa50] sm:$0xff] }
  0x73   :  { %708 = vmatprep.subr.mxu0 %v341_v20  ;;  %779 = vmatprep.subr.mxu1 %v343_v21  ;;  %v386_v20 = vld [vmem:[#allocation5 + $0xa38] sm:$0xff]  ;;  %v388_v21 = vld [vmem:[#allocation5 + $0xa48] sm:$0xff] }
  0x74   :  { %709 = vmatpush1.msra.mxu0 %v340_v22  ;;  %780 = vmatpush1.msra.mxu1 %v342_v23  ;;  %v366_v22 = vld [vmem:[#allocation5 + $0x998] sm:$0xff]  ;;  %v368_v23 = vld [vmem:[#allocation5 + $0x9a8] sm:$0xff] }
  0x75   :  { %710 = vmatprep.subr.mxu0 %v320_v24  ;;  %781 = vmatprep.subr.mxu1 %v322_v25  ;;  %v365_v24 = vld [vmem:[#allocation5 + $0x990] sm:$0xff]  ;;  %v367_v25 = vld [vmem:[#allocation5 + $0x9a0] sm:$0xff] }
  0x76   :  { %711 = vmatpush1.msra.mxu0 %v319_v26  ;;  %782 = vmatpush1.msra.mxu1 %v321_v27  ;;  %v345_v26 = vld [vmem:[#allocation5 + $0x8f0] sm:$0xff]  ;;  %v347_v27 = vld [vmem:[#allocation5 + $0x900] sm:$0xff] }
  0x77   :  { %712 = vmatprep.subr.mxu0 %v299_v28  ;;  %783 = vmatprep.subr.mxu1 %v301_v29  ;;  %v344_v28 = vld [vmem:[#allocation5 + $0x8e8] sm:$0xff]  ;;  %v346_v29 = vld [vmem:[#allocation5 + $0x8f8] sm:$0xff] }
  0x78   :  { %713 = vmatpush1.msra.mxu0 %v298_v30  ;;  %784 = vmatpush1.msra.mxu1 %v300_v31  ;;  %v324_v30 = vld [vmem:[#allocation5 + $0x848] sm:$0xff]  ;;  %v326_v31 = vld [vmem:[#allocation5 + $0x858] sm:$0xff] }
  0x79   :  { %714 = vmatprep.subr.mxu0 %v278_v32  ;;  %785 = vmatprep.subr.mxu1 %v280_v33  ;;  %v323_v32 = vld [vmem:[#allocation5 + $0x840] sm:$0xff]  ;;  %v325_v33 = vld [vmem:[#allocation5 + $0x850] sm:$0xff] }
  0x7a   :  { %715 = vmatpush1.msra.mxu0 %v277_v34  ;;  %786 = vmatpush1.msra.mxu1 %v279_v35  ;;  %v303_v34 = vld [vmem:[#allocation5 + $0x7a0] sm:$0xff]  ;;  %v305_v35 = vld [vmem:[#allocation5 + $0x7b0] sm:$0xff] }
  0x7b   :  { %716 = vmatprep.subr.mxu0 %v257_v36  ;;  %787 = vmatprep.subr.mxu1 %v259_v37  ;;  %v302_v36 = vld [vmem:[#allocation5 + $0x798] sm:$0xff]  ;;  %v304_v37 = vld [vmem:[#allocation5 + $0x7a8] sm:$0xff] }
  0x7c   :  { %717 = vmatpush1.msra.mxu0 %v256_v38  ;;  %788 = vmatpush1.msra.mxu1 %v258_v39  ;;  %v282_v38 = vld [vmem:[#allocation5 + $0x6f8] sm:$0xff]  ;;  %v284_v39 = vld [vmem:[#allocation5 + $0x708] sm:$0xff] }
  0x7d   :  { %718 = vmatprep.subr.mxu0 %v236_v40  ;;  %789 = vmatprep.subr.mxu1 %v238_v41  ;;  %v281_v40 = vld [vmem:[#allocation5 + $0x6f0] sm:$0xff]  ;;  %v283_v41 = vld [vmem:[#allocation5 + $0x700] sm:$0xff] }
  0x7e   :  { %719 = vmatpush1.msra.mxu0 %v235_v42  ;;  %790 = vmatpush1.msra.mxu1 %v237_v43  ;;  %v261_v42 = vld [vmem:[#allocation5 + $0x650] sm:$0xff]  ;;  %v263_v43 = vld [vmem:[#allocation5 + $0x660] sm:$0xff] }
  0x7f   :  { %720 = vmatprep.subr.mxu0 %v215_v44  ;;  %791 = vmatprep.subr.mxu1 %v217_v45  ;;  %v260_v44 = vld [vmem:[#allocation5 + $0x648] sm:$0xff]  ;;  %v262_v45 = vld [vmem:[#allocation5 + $0x658] sm:$0xff] }
  0x80   :  { %721 = vmatpush1.msra.mxu0 %v214_v46  ;;  %792 = vmatpush1.msra.mxu1 %v216_v47  ;;  %v240_v46 = vld [vmem:[#allocation5 + $0x5a8] sm:$0xff]  ;;  %v242_v47 = vld [vmem:[#allocation5 + $0x5b8] sm:$0xff] }
  0x81   :  { %722 = vmatprep.subr.mxu0 %v194_v48  ;;  %793 = vmatprep.subr.mxu1 %v196_v49  ;;  %v239_v48 = vld [vmem:[#allocation5 + $0x5a0] sm:$0xff]  ;;  %v241_v49 = vld [vmem:[#allocation5 + $0x5b0] sm:$0xff] }
  0x82   :  { %723 = vmatpush1.msra.mxu0 %v193_v50  ;;  %794 = vmatpush1.msra.mxu1 %v195_v51  ;;  %v219_v50 = vld [vmem:[#allocation5 + $0x500] sm:$0xff]  ;;  %v221_v51 = vld [vmem:[#allocation5 + $0x510] sm:$0xff] }
  0x83   :  { %724 = vmatprep.subr.mxu0 %v173_v52  ;;  %795 = vmatprep.subr.mxu1 %v175_v53  ;;  %v218_v52 = vld [vmem:[#allocation5 + $0x4f8] sm:$0xff]  ;;  %v220_v53 = vld [vmem:[#allocation5 + $0x508] sm:$0xff] }
  0x84   :  { %725 = vmatpush1.msra.mxu0 %v172_v54  ;;  %796 = vmatpush1.msra.mxu1 %v174_v55  ;;  %v198_v54 = vld [vmem:[#allocation5 + $0x458] sm:$0xff]  ;;  %v200_v55 = vld [vmem:[#allocation5 + $0x468] sm:$0xff] }
  0x85   :  { %726 = vmatprep.subr.mxu0 %v152_v56  ;;  %797 = vmatprep.subr.mxu1 %v154_v57  ;;  %v197_v56 = vld [vmem:[#allocation5 + $0x450] sm:$0xff]  ;;  %v199_v57 = vld [vmem:[#allocation5 + $0x460] sm:$0xff] }
  0x86   :  { %727 = vmatpush1.msra.mxu0 %v151_v58  ;;  %798 = vmatpush1.msra.mxu1 %v153_v59  ;;  %v177_v58 = vld [vmem:[#allocation5 + $0x3b0] sm:$0xff]  ;;  %v179_v59 = vld [vmem:[#allocation5 + $0x3c0] sm:$0xff] }
  0x87   :  { %728 = vmatprep.subr.mxu0 %v131_v60  ;;  %799 = vmatprep.subr.mxu1 %v133_v61  ;;  %v176_v60 = vld [vmem:[#allocation5 + $0x3a8] sm:$0xff]  ;;  %v178_v61 = vld [vmem:[#allocation5 + $0x3b8] sm:$0xff] }
  0x88   :  { %729 = vmatpush1.msra.mxu0 %v130_v62  ;;  %800 = vmatpush1.msra.mxu1 %v132_v63  ;;  %v156_v62 = vld [vmem:[#allocation5 + $0x308] sm:$0xff]  ;;  %v158_v63 = vld [vmem:[#allocation5 + $0x318] sm:$0xff] }
  0x89   :  { %730 = vmatprep.subr.mxu0 %v110_v0  ;;  %801 = vmatprep.subr.mxu1 %v112_v1  ;;  %v155_v0 = vld [vmem:[#allocation5 + $0x300] sm:$0xff]  ;;  %v157_v1 = vld [vmem:[#allocation5 + $0x310] sm:$0xff] }
  0x8a   :  { %731 = vmatpush1.msra.mxu0 %v109_v2  ;;  %802 = vmatpush1.msra.mxu1 %v111_v4  ;;  %v135_v2 = vld [vmem:[#allocation5 + $0x260] sm:$0xff]  ;;  %v137_v4 = vld [vmem:[#allocation5 + $0x270] sm:$0xff] }
  0x8b   :  { %732 = vmatprep.subr.mxu0 %v89_v6  ;;  %803 = vmatprep.subr.mxu1 %v91_v7  ;;  %v134_v6 = vld [vmem:[#allocation5 + $0x258] sm:$0xff]  ;;  %v136_v7 = vld [vmem:[#allocation5 + $0x268] sm:$0xff] }
  0x8c   :  { %733 = vmatpush1.msra.mxu0 %v88_v8  ;;  %804 = vmatpush1.msra.mxu1 %v90_v9  ;;  %v114_v8 = vld [vmem:[#allocation5 + $0x1b8] sm:$0xff]  ;;  %v116_v9 = vld [vmem:[#allocation5 + $0x1c8] sm:$0xff] }
  0x8d   :  { %734 = vmatprep.subr.mxu0 %v68_v10  ;;  %805 = vmatprep.subr.mxu1 %v70_v11  ;;  %v113_v10 = vld [vmem:[#allocation5 + $0x1b0] sm:$0xff]  ;;  %v115_v11 = vld [vmem:[#allocation5 + $0x1c0] sm:$0xff] }
  0x8e   :  { %735 = vmatpush1.msra.mxu0 %v67_v12  ;;  %806 = vmatpush1.msra.mxu1 %v69_v13  ;;  %v93_v12 = vld [vmem:[#allocation5 + $0x110] sm:$0xff]  ;;  %v95_v13 = vld [vmem:[#allocation5 + $0x120] sm:$0xff] }
  0x8f   :  { %766 = vmatprep.subr.mxu0 %v404_v14  ;;  %837 = vmatprep.subr.mxu1 %v406_v15  ;;  %v92_v14 = vld [vmem:[#allocation5 + $0x108] sm:$0xff]  ;;  %v94_v15 = vld [vmem:[#allocation5 + $0x118] sm:$0xff] }
  0x90   :  { %767 = vmatpush2.msra.mxu0 %v403_v16  ;;  %2050 = vmatprep.mubr.msk.f32.mxu0 %vm416_vm0, %v2310_v3  ;;  %v72_v16 = vld [vmem:[#allocation5 + $0x68] sm:$0xff] }
  0x91   :  { %838 = vmatpush2.msra.mxu1 %v405_v17  ;;  %769 = vmatmul.mubr.f32.vlgmr.msra.gmra.mxu0 %v2312_v5  ;;  %v74_v17 = vld [vmem:[#allocation5 + $0x78] sm:$0xff] }
  0x92   :  { %2051 = vmatprep.mubr.msk.f32.mxu1 %vm416_vm0, %v2310_v3  ;;  %846 = vmatprep.subr.mxu0 %v387_v18  ;;  %v71_v18 = vld [vmem:[#allocation5 + $0x60] sm:$0xff] }
  0x93   :  { %917 = vmatprep.subr.mxu1 %v389_v19  ;;  %840 = vmatmul.mubr.f32.vlgmr.msra.gmra.mxu1 %v2312_v5  ;;  %v73_v19 = vld [vmem:[#allocation5 + $0x70] sm:$0xff] }
  0x94   :  { %847 = vmatpush1.msra.mxu0 %v386_v20  ;;  %918 = vmatpush1.msra.mxu1 %v388_v21  ;;  %v408_v20 = vld [vmem:[#allocation5 + $0xae8] sm:$0xff]  ;;  %v410_v21 = vld [vmem:[#allocation5 + $0xaf8] sm:$0xff] }
  0x95   :  { %848 = vmatprep.subr.mxu0 %v366_v22  ;;  %919 = vmatprep.subr.mxu1 %v368_v23  ;;  %v407_v22 = vld [vmem:[#allocation5 + $0xae0] sm:$0xff]  ;;  %v409_v23 = vld [vmem:[#allocation5 + $0xaf0] sm:$0xff] }
  0x96   :  { %849 = vmatpush1.msra.mxu0 %v365_v24  ;;  %920 = vmatpush1.msra.mxu1 %v367_v25  ;;  %v391_v24 = vld [vmem:[#allocation5 + $0xa60] sm:$0xff]  ;;  %v393_v25 = vld [vmem:[#allocation5 + $0xa70] sm:$0xff] }
  0x97   :  { %850 = vmatprep.subr.mxu0 %v345_v26  ;;  %921 = vmatprep.subr.mxu1 %v347_v27  ;;  %v390_v26 = vld [vmem:[#allocation5 + $0xa58] sm:$0xff]  ;;  %v392_v27 = vld [vmem:[#allocation5 + $0xa68] sm:$0xff] }
  0x98   :  { %851 = vmatpush1.msra.mxu0 %v344_v28  ;;  %922 = vmatpush1.msra.mxu1 %v346_v29  ;;  %v370_v28 = vld [vmem:[#allocation5 + $0x9b8] sm:$0xff]  ;;  %v372_v29 = vld [vmem:[#allocation5 + $0x9c8] sm:$0xff] }
  0x99   :  { %852 = vmatprep.subr.mxu0 %v324_v30  ;;  %923 = vmatprep.subr.mxu1 %v326_v31  ;;  %v369_v30 = vld [vmem:[#allocation5 + $0x9b0] sm:$0xff]  ;;  %v371_v31 = vld [vmem:[#allocation5 + $0x9c0] sm:$0xff] }
  0x9a   :  { %853 = vmatpush1.msra.mxu0 %v323_v32  ;;  %924 = vmatpush1.msra.mxu1 %v325_v33  ;;  %v349_v32 = vld [vmem:[#allocation5 + $0x910] sm:$0xff]  ;;  %v351_v33 = vld [vmem:[#allocation5 + $0x920] sm:$0xff] }
  0x9b   :  { %854 = vmatprep.subr.mxu0 %v303_v34  ;;  %925 = vmatprep.subr.mxu1 %v305_v35  ;;  %v348_v34 = vld [vmem:[#allocation5 + $0x908] sm:$0xff]  ;;  %v350_v35 = vld [vmem:[#allocation5 + $0x918] sm:$0xff] }
  0x9c   :  { %855 = vmatpush1.msra.mxu0 %v302_v36  ;;  %926 = vmatpush1.msra.mxu1 %v304_v37  ;;  %v328_v36 = vld [vmem:[#allocation5 + $0x868] sm:$0xff]  ;;  %v327_v37 = vld [vmem:[#allocation5 + $0x860] sm:$0xff] }
  0x9d   :  { %856 = vmatprep.subr.mxu0 %v282_v38  ;;  %927 = vmatprep.subr.mxu1 %v284_v39  ;;  %v329_v38 = vld [vmem:[#allocation5 + $0x870] sm:$0xff] }
  0x9e   :  { %857 = vmatpush1.msra.mxu0 %v281_v40  ;;  %928 = vmatpush1.msra.mxu1 %v283_v41  ;;  %v309_v39 = vld [vmem:[#allocation5 + $0x7d0] sm:$0xff]  ;;  %v306_v40 = vld [vmem:[#allocation5 + $0x7b8] sm:$0xff]  ;;  %v308_v41 = vld [vmem:[#allocation5 + $0x7c8] sm:$0xff] }
  0x9f   :  { %858 = vmatprep.subr.mxu0 %v261_v42  ;;  %929 = vmatprep.subr.mxu1 %v263_v43  ;;  %v286_v42 = vld [vmem:[#allocation5 + $0x718] sm:$0xff]  ;;  %v288_v43 = vld [vmem:[#allocation5 + $0x728] sm:$0xff] }
  0xa0   :  { %859 = vmatpush1.msra.mxu0 %v260_v44  ;;  %930 = vmatpush1.msra.mxu1 %v262_v45  ;;  %v285_v44 = vld [vmem:[#allocation5 + $0x710] sm:$0xff]  ;;  %v287_v45 = vld [vmem:[#allocation5 + $0x720] sm:$0xff] }
  0xa1   :  { %860 = vmatprep.subr.mxu0 %v240_v46  ;;  %931 = vmatprep.subr.mxu1 %v242_v47  ;;  %v265_v46 = vld [vmem:[#allocation5 + $0x670] sm:$0xff]  ;;  %v267_v47 = vld [vmem:[#allocation5 + $0x680] sm:$0xff] }
  0xa2   :  { %861 = vmatpush1.msra.mxu0 %v239_v48  ;;  %932 = vmatpush1.msra.mxu1 %v241_v49  ;;  %v264_v48 = vld [vmem:[#allocation5 + $0x668] sm:$0xff]  ;;  %v266_v49 = vld [vmem:[#allocation5 + $0x678] sm:$0xff] }
  0xa3   :  { %862 = vmatprep.subr.mxu0 %v219_v50  ;;  %933 = vmatprep.subr.mxu1 %v221_v51  ;;  %v244_v50 = vld [vmem:[#allocation5 + $0x5c8] sm:$0xff]  ;;  %v246_v51 = vld [vmem:[#allocation5 + $0x5d8] sm:$0xff] }
  0xa4   :  { %863 = vmatpush1.msra.mxu0 %v218_v52  ;;  %934 = vmatpush1.msra.mxu1 %v220_v53  ;;  %v243_v52 = vld [vmem:[#allocation5 + $0x5c0] sm:$0xff]  ;;  %v245_v53 = vld [vmem:[#allocation5 + $0x5d0] sm:$0xff] }
  0xa5   :  { %864 = vmatprep.subr.mxu0 %v198_v54  ;;  %935 = vmatprep.subr.mxu1 %v200_v55  ;;  %v223_v54 = vld [vmem:[#allocation5 + $0x520] sm:$0xff]  ;;  %v225_v55 = vld [vmem:[#allocation5 + $0x530] sm:$0xff] }
  0xa6   :  { %865 = vmatpush1.msra.mxu0 %v197_v56  ;;  %936 = vmatpush1.msra.mxu1 %v199_v57  ;;  %v222_v56 = vld [vmem:[#allocation5 + $0x518] sm:$0xff]  ;;  %v224_v57 = vld [vmem:[#allocation5 + $0x528] sm:$0xff] }
  0xa7   :  { %866 = vmatprep.subr.mxu0 %v177_v58  ;;  %937 = vmatprep.subr.mxu1 %v179_v59  ;;  %v202_v58 = vld [vmem:[#allocation5 + $0x478] sm:$0xff]  ;;  %v204_v59 = vld [vmem:[#allocation5 + $0x488] sm:$0xff] }
  0xa8   :  { %867 = vmatpush1.msra.mxu0 %v176_v60  ;;  %938 = vmatpush1.msra.mxu1 %v178_v61  ;;  %v201_v60 = vld [vmem:[#allocation5 + $0x470] sm:$0xff]  ;;  %v203_v61 = vld [vmem:[#allocation5 + $0x480] sm:$0xff] }
  0xa9   :  { %868 = vmatprep.subr.mxu0 %v156_v62  ;;  %939 = vmatprep.subr.mxu1 %v158_v63  ;;  %v181_v62 = vld [vmem:[#allocation5 + $0x3d0] sm:$0xff]  ;;  %v183_v63 = vld [vmem:[#allocation5 + $0x3e0] sm:$0xff] }
  0xaa   :  { %869 = vmatpush1.msra.mxu0 %v155_v0  ;;  %940 = vmatpush1.msra.mxu1 %v157_v1  ;;  %v180_v0 = vld [vmem:[#allocation5 + $0x3c8] sm:$0xff]  ;;  %v182_v1 = vld [vmem:[#allocation5 + $0x3d8] sm:$0xff] }
  0xab   :  { %870 = vmatprep.subr.mxu0 %v135_v2  ;;  %941 = vmatprep.subr.mxu1 %v137_v4  ;;  %v160_v2 = vld [vmem:[#allocation5 + $0x328] sm:$0xff]  ;;  %v162_v4 = vld [vmem:[#allocation5 + $0x338] sm:$0xff] }
  0xac   :  { %871 = vmatpush1.msra.mxu0 %v134_v6  ;;  %942 = vmatpush1.msra.mxu1 %v136_v7  ;;  %v159_v6 = vld [vmem:[#allocation5 + $0x320] sm:$0xff]  ;;  %v161_v7 = vld [vmem:[#allocation5 + $0x330] sm:$0xff] }
  0xad   :  { %872 = vmatprep.subr.mxu0 %v114_v8  ;;  %943 = vmatprep.subr.mxu1 %v116_v9  ;;  %v139_v8 = vld [vmem:[#allocation5 + $0x280] sm:$0xff]  ;;  %v141_v9 = vld [vmem:[#allocation5 + $0x290] sm:$0xff] }
  0xae   :  { %873 = vmatpush1.msra.mxu0 %v113_v10  ;;  %944 = vmatpush1.msra.mxu1 %v115_v11  ;;  %v138_v10 = vld [vmem:[#allocation5 + $0x278] sm:$0xff]  ;;  %v140_v11 = vld [vmem:[#allocation5 + $0x288] sm:$0xff] }
  0xaf   :  { %874 = vmatprep.subr.mxu0 %v93_v12  ;;  %945 = vmatprep.subr.mxu1 %v95_v13  ;;  %v118_v12 = vld [vmem:[#allocation5 + $0x1d8] sm:$0xff]  ;;  %v120_v13 = vld [vmem:[#allocation5 + $0x1e8] sm:$0xff] }
  0xb0   :  { %875 = vmatpush1.msra.mxu0 %v92_v14  ;;  %946 = vmatpush1.msra.mxu1 %v94_v15  ;;  %v117_v14 = vld [vmem:[#allocation5 + $0x1d0] sm:$0xff]  ;;  %v119_v15 = vld [vmem:[#allocation5 + $0x1e0] sm:$0xff] }
  0xb1   :  { %876 = vmatprep.subr.mxu0 %v72_v16  ;;  %947 = vmatprep.subr.mxu1 %v74_v17  ;;  %v97_v16 = vld [vmem:[#allocation5 + $0x130] sm:$0xff]  ;;  %v99_v17 = vld [vmem:[#allocation5 + $0x140] sm:$0xff] }
  0xb2   :  { %877 = vmatpush1.msra.mxu0 %v71_v18  ;;  %948 = vmatpush1.msra.mxu1 %v73_v19  ;;  %v96_v18 = vld [vmem:[#allocation5 + $0x128] sm:$0xff]  ;;  %v98_v19 = vld [vmem:[#allocation5 + $0x138] sm:$0xff] }
  0xb3   :  { %908 = vmatprep.subr.mxu0 %v408_v20  ;;  %979 = vmatprep.subr.mxu1 %v410_v21  ;;  %v76_v20 = vld [vmem:[#allocation5 + $0x88] sm:$0xff]  ;;  %v78_v21 = vld [vmem:[#allocation5 + $0x98] sm:$0xff] }
  0xb4   :  { %909 = vmatpush2.msra.mxu0 %v407_v22  ;;  %2052 = vmatprep.mubr.msk.f32.mxu0 %vm416_vm0, %v2310_v3  ;;  %v75_v22 = vld [vmem:[#allocation5 + $0x80] sm:$0xff] }
  0xb5   :  { %980 = vmatpush2.msra.mxu1 %v409_v23  ;;  %911 = vmatmul.mubr.f32.vlgmr.msra.gmra.mxu0 %v2312_v5  ;;  %v77_v23 = vld [vmem:[#allocation5 + $0x90] sm:$0xff] }
  0xb6   :  { %2053 = vmatprep.mubr.msk.f32.mxu1 %vm416_vm0, %v2310_v3  ;;  %988 = vmatprep.subr.mxu0 %v391_v24  ;;  %v330_v3 = vld [vmem:[#allocation5 + $0x878] sm:$0xff]  ;;  %v412_v24 = vld [vmem:[#allocation5 + $0xb08] sm:$0xff] }
  0xb7   :  { %1059 = vmatprep.subr.mxu1 %v393_v25  ;;  %982 = vmatmul.mubr.f32.vlgmr.msra.gmra.mxu1 %v2312_v5  ;;  %v307_v5 = vld [vmem:[#allocation5 + $0x7c0] sm:$0xff]  ;;  %v414_v25 = vld [vmem:[#allocation5 + $0xb18] sm:$0xff] }
  0xb8   :  { %989 = vmatpush1.msra.mxu0 %v390_v26  ;;  %1060 = vmatpush1.msra.mxu1 %v392_v27  ;;  %v411_v26 = vld [vmem:[#allocation5 + $0xb00] sm:$0xff]  ;;  %v413_v27 = vld [vmem:[#allocation5 + $0xb10] sm:$0xff] }
  0xb9   :  { %990 = vmatprep.subr.mxu0 %v370_v28  ;;  %1061 = vmatprep.subr.mxu1 %v372_v29  ;;  %v2176_v28 = vld [vmem:[#allocation2 + $0x8] sm:$0xff]  ;;  %v1224_v29 = vld [vmem:[#allocation7 + $0x40] sm:$0xff] }
  0xba   :  { %991 = vmatpush1.msra.mxu0 %v369_v30  ;;  %1062 = vmatpush1.msra.mxu1 %v371_v31  ;;  %v394_v30 = vld [vmem:[#allocation5 + $0xa78] sm:$0xff]  ;;  %v1223_v31 = vld [vmem:[#allocation7 + $0x38] sm:$0xff] }
  0xbb   :  { %992 = vmatprep.subr.mxu0 %v349_v32  ;;  %1063 = vmatprep.subr.mxu1 %v351_v33  ;;  %v2340_v32 = vld [vmem:[#allocation2] sm:$0xff] }
  0xbc   :  { %993 = vmatpush1.msra.mxu0 %v348_v34  ;;  %1064 = vmatpush1.msra.mxu1 %v350_v35  ;;  %v1217_v33 = vld [vmem:[#allocation7 + $0x8] sm:$0xff]  ;;  %v2271_v34 = vmov 0.0  }
  0xbd   :  { %994 = vmatprep.subr.mxu0 %v328_v36  ;;  %1065 = vmatprep.subr.mxu1 %v330_v3  ;;  %v373_v35 = vld [vmem:[#allocation5 + $0x9d0] sm:$0xff]  ;;  %v1216_v36 = vld [vmem:[#allocation7] sm:$0xff] }
  0xbe   :  { %995 = vmatpush1.msra.mxu0 %v327_v37  ;;  %1066 = vmatpush1.msra.mxu1 %v329_v38  ;;  %v2349_v3 = vld [vmem:[%s2726_s1] sm:$0xff]  ;;  %v352_v37 = vld [vmem:[#allocation5 + $0x928] sm:$0xff] }
  0xbf   :  { %996 = vmatprep.subr.mxu0 %v307_v5  ;;  %1067 = vmatprep.subr.mxu1 %v309_v39  ;;  %v1228_v38 = vld [vmem:[#allocation7 + $0x60] sm:$0xff]  ;;  %v331_v5 = vld [vmem:[#allocation5 + $0x880] sm:$0xff] }
  0xc0   :  { %997 = vmatpush1.msra.mxu0 %v306_v40  ;;  %1068 = vmatpush1.msra.mxu1 %v308_v41  ;;  %v1227_v39 = vld [vmem:[#allocation7 + $0x58] sm:$0xff]  ;;  %v2359_v40 = vld [vmem:[%s2726_s1 + $0x8] sm:$0xff] }
  0xc1   :  { %998 = vmatprep.subr.mxu0 %v286_v42  ;;  %1069 = vmatprep.subr.mxu1 %v288_v43  ;;  %v310_v41 = vld [vmem:[#allocation5 + $0x7d8] sm:$0xff]  ;;  %v289_v42 = vld [vmem:[#allocation5 + $0x730] sm:$0xff] }
  0xc2   :  { %999 = vmatpush1.msra.mxu0 %v285_v44  ;;  %1070 = vmatpush1.msra.mxu1 %v287_v45  ;;  %v1221_v43 = vld [vmem:[#allocation7 + $0x28] sm:$0xff]  ;;  %v2370_v44 = vld [vmem:[%s2726_s1 + $0x10] sm:$0xff]  ;;  %v268_v45 = vld [vmem:[#allocation5 + $0x688] sm:$0xff] }
  0xc3   :  { %1000 = vmatprep.subr.mxu0 %v265_v46  ;;  %1071 = vmatprep.subr.mxu1 %v267_v47  ;;  %v247_v46 = vld [vmem:[#allocation5 + $0x5e0] sm:$0xff]  ;;  %v1220_v47 = vld [vmem:[#allocation7 + $0x20] sm:$0xff] }
  0xc4   :  { %1001 = vmatpush1.msra.mxu0 %v264_v48  ;;  %1072 = vmatpush1.msra.mxu1 %v266_v49  ;;  %v2381_v48 = vld [vmem:[%s2726_s1 + $0x18] sm:$0xff]  ;;  %v226_v49 = vld [vmem:[#allocation5 + $0x538] sm:$0xff] }
  0xc5   :  { %1002 = vmatprep.subr.mxu0 %v244_v50  ;;  %1073 = vmatprep.subr.mxu1 %v246_v51  ;;  %v205_v50 = vld [vmem:[#allocation5 + $0x490] sm:$0xff] }
  0xc6   :  { %1003 = vmatpush1.msra.mxu0 %v243_v52  ;;  %1074 = vmatpush1.msra.mxu1 %v245_v53  ;;  %v2391_v51 = vld [vmem:[%s2726_s1 + $0x20] sm:$0xff]  ;;  %v184_v52 = vld [vmem:[#allocation5 + $0x3e8] sm:$0xff]  ;;  %v163_v53 = vld [vmem:[#allocation5 + $0x340] sm:$0xff] }
  0xc7   :  { %1004 = vmatprep.subr.mxu0 %v223_v54  ;;  %1075 = vmatprep.subr.mxu1 %v225_v55  ;;  %v2401_v54 = vld [vmem:[%s2726_s1 + $0x28] sm:$0xff] }
  0xc8   :  { %1005 = vmatpush1.msra.mxu0 %v222_v56  ;;  %1076 = vmatpush1.msra.mxu1 %v224_v57  ;;  %v142_v55 = vld [vmem:[#allocation5 + $0x298] sm:$0xff]  ;;  %v121_v56 = vld [vmem:[#allocation5 + $0x1f0] sm:$0xff]  ;;  %v2411_v57 = vld [vmem:[%s2726_s1 + $0x30] sm:$0xff] }
  0xc9   :  { %1006 = vmatprep.subr.mxu0 %v202_v58  ;;  %1077 = vmatprep.subr.mxu1 %v204_v59  ;;  %v100_v58 = vld [vmem:[#allocation5 + $0x148] sm:$0xff]  ;;  %v79_v59 = vld [vmem:[#allocation5 + $0xa0] sm:$0xff] }
  0xca   :  { %1007 = vmatpush1.msra.mxu0 %v201_v60  ;;  %1078 = vmatpush1.msra.mxu1 %v203_v61  ;;  %v2421_v60 = vld [vmem:[%s2726_s1 + $0x38] sm:$0xff]  ;;  %v415_v61 = vld [vmem:[#allocation5 + $0xb20] sm:$0xff] }
  0xcb   :  { %1008 = vmatprep.subr.mxu0 %v181_v62  ;;  %1079 = vmatprep.subr.mxu1 %v183_v63  ;;  %v1226_v62 = vld [vmem:[#allocation7 + $0x50] sm:$0xff]  ;;  %v1225_v63 = vld [vmem:[#allocation7 + $0x48] sm:$0xff] }
  0xcc   :  { %1009 = vmatpush1.msra.mxu0 %v180_v0  ;;  %1080 = vmatpush1.msra.mxu1 %v182_v1  ;;  %v1219_v0 = vld [vmem:[#allocation7 + $0x18] sm:$0xff]  ;;  %v2430_v1 = vld [vmem:[%s2726_s1 + $0x40] sm:$0xff] }
  0xcd   :  { %1010 = vmatprep.subr.mxu0 %v160_v2  ;;  %1081 = vmatprep.subr.mxu1 %v162_v4  ;;  %v1218_v2 = vld [vmem:[#allocation7 + $0x10] sm:$0xff]  ;;  %v1229_v4 = vld [vmem:[#allocation7 + $0x68] sm:$0xff] }
  0xce   :  { %1011 = vmatpush1.msra.mxu0 %v159_v6  ;;  %1082 = vmatpush1.msra.mxu1 %v161_v7  ;;  %v1222_v6 = vld [vmem:[#allocation7 + $0x30] sm:$0xff] }
  0xcf   :  { %1012 = vmatprep.subr.mxu0 %v139_v8  ;;  %1083 = vmatprep.subr.mxu1 %v141_v9  ;;  %v2441_v7 = vld [vmem:[%s2726_s1 + $0x48] sm:$0xff]  ;;  %v2453_v8 = vld [vmem:[%s2726_s1 + $0x50] sm:$0xff]  ;;  %v2464_v9 = vld [vmem:[%s2726_s1 + $0x58] sm:$0xff] }
  0xd0   :  { %1013 = vmatpush1.msra.mxu0 %v138_v10  ;;  %1084 = vmatpush1.msra.mxu1 %v140_v11  ;;  %v2475_v10 = vld [vmem:[%s2726_s1 + $0x60] sm:$0xff]  ;;  %v2486_v11 = vld [vmem:[%s2726_s1 + $0x68] sm:$0xff] }
  0xd1   :  { %1014 = vmatprep.subr.mxu0 %v118_v12  ;;  %1085 = vmatprep.subr.mxu1 %v120_v13  ;;  %v2497_v12 = vld [vmem:[%s2726_s1 + $0x70] sm:$0xff]  ;;  %v2508_v13 = vld [vmem:[%s2726_s1 + $0x78] sm:$0xff]  ;;  %s2272_s1 = smov [#allocation8]  }
  0xd2   :  { %1015 = vmatpush1.msra.mxu0 %v117_v14  ;;  %1086 = vmatpush1.msra.mxu1 %v119_v15  ;;  %s2033_s10 = sshll.u32 %s2272_s1, 4  ;;  %s2034_s10 = int_to_ptr.vmem [resolvable:$true] %s2033_s10 }
  0xd3   :  { %1016 = vmatprep.subr.mxu0 %v97_v16  ;;  %1087 = vmatprep.subr.mxu1 %v99_v17  ;;  %s2238_s11 = scalar_lea.vmem %s2034_s10, 2688  ;;  %p2243_p2 = scmp.lt.s32.totalorder %s2034_s10, %s2034_s10 }
  0xd4   :  { %1017 = vmatpush1.msra.mxu0 %v96_v18  ;;  %1088 = vmatpush1.msra.mxu1 %v98_v19  ;;  %p2239_p1 = scmp.ne.s32.totalorder %s2034_s10, %s2238_s11  ;;  %p2244_p3 = scmp.lt.s32.totalorder %s2238_s11, %s2238_s11 }
  0xd5   :  { %1018 = vmatprep.subr.mxu0 %v76_v20  ;;  %1089 = vmatprep.subr.mxu1 %v78_v21 }
  0xd6   :  { %1019 = vmatpush1.msra.mxu0 %v75_v22  ;;  %1090 = vmatpush1.msra.mxu1 %v77_v23  ;;  %p2245_p4 = por %p2244_p3, %p2243_p2 }
  0xd7   :  { %1050 = vmatprep.subr.mxu0 %v412_v24  ;;  %1121 = vmatprep.subr.mxu1 %v414_v25 }
  0xd8   :  { %1051 = vmatpush2.msra.mxu0 %v411_v26  ;;  %2054 = vmatprep.mubr.msk.f32.mxu0 %vm416_vm0, %v2176_v28  ;;  %p2246_p5 = pnand %p2245_p4, %p2239_p1 }
  0xd9   :  { %1122 = vmatpush2.msra.mxu1 %v413_v27  ;;  %2055 = vmatprep.mubr.msk.f32.mxu1 %vm416_vm0, %v2176_v28 }
  0xda   :  { %1053 = vmatmul.mubr.f32.vlgmr.msra.gmra.mxu0 %v2340_v32  ;;  %1124 = vmatmul.mubr.f32.vlgmr.msra.gmra.mxu1 %v2340_v32 }
  0xdb   :  { %1130 = vmatprep.subr.mxu0 %v2271_v34  ;;  %1307 = vmatprep.subr.mxu1 %v1224_v29 }
  0xdc   :  { %1131 = vmatpush1.msra.mxu0 %v394_v30  ;;  %1308 = vmatpush1.msra.mxu1 %v1223_v31 }
  0xdd   :  { %1132 = vmatprep.subr.mxu0 %v2271_v34  ;;  %1309 = vmatprep.subr.mxu1 %v1217_v33 }
  0xde   :  { %1133 = vmatpush1.msra.mxu0 %v373_v35  ;;  %1310 = vmatpush1.msra.mxu1 %v1216_v36 }
  0xdf   :  { %1343 = vmatprep.mubr.f32.mxu1 %v2271_v34  ;;  %1134 = vmatprep.subr.mxu0 %v2271_v34 }
  0xe0   :  { %2057 = vmatmul.mubr.msk.f32.vlgmr.msra.gmra.mxu1 %vm1230_vm1, %v2349_v3  ;;  %1135 = vmatpush1.msra.mxu0 %v352_v37 }
  0xe1   :  { %1136 = vmatprep.subr.mxu0 %v2271_v34  ;;  %1613 = vmatprep.subr.mxu1 %v1228_v38 }
  0xe2   :  { %1137 = vmatpush1.msra.mxu0 %v331_v5  ;;  %1349 = vmatprep.mubr.f32.mxu1 %v2271_v34 }
  0xe3   :  { %1614 = vmatpush1.msra.mxu1 %v1227_v39  ;;  %1138 = vmatprep.subr.mxu0 %v2271_v34 }
  0xe4   :  { %2058 = vmatmul.mubr.msk.f32.gmra.mxu1 %vm1230_vm1, %v2359_v40  ;;  %1139 = vmatpush1.msra.mxu0 %v310_v41 }
  0xe5   :  { %1140 = vmatprep.subr.mxu0 %v2271_v34  ;;  %1355 = vmatprep.mubr.f32.mxu1 %v2271_v34 }
  0xe6   :  { %1141 = vmatpush1.msra.mxu0 %v289_v42  ;;  %2056 = vmatprep.mubr.msk.f32.mxu0 %vm416_vm0, %v2176_v28 }
  0xe7   :  { %1142 = vmatprep.subr.mxu0 %v2271_v34  ;;  %1615 = vmatprep.subr.mxu1 %v1221_v43 }
  0xe8   :  { %2059 = vmatmul.mubr.msk.f32.gmra.mxu1 %vm1230_vm1, %v2370_v44  ;;  %1143 = vmatpush1.msra.mxu0 %v268_v45 }
  0xe9   :  { %1144 = vmatprep.subr.mxu0 %v2271_v34  ;;  %1361 = vmatprep.mubr.f32.mxu1 %v2271_v34 }
  0xea   :  { %1145 = vmatpush1.msra.mxu0 %v247_v46  ;;  %1616 = vmatpush1.msra.mxu1 %v1220_v47 }
  0xeb   :  { %1146 = vmatprep.subr.mxu0 %v2271_v34 }
  0xec   :  { %2060 = vmatmul.mubr.msk.f32.gmra.mxu1 %vm1230_vm1, %v2381_v48  ;;  %1147 = vmatpush1.msra.mxu0 %v226_v49 }
  0xed   :  { %1148 = vmatprep.subr.mxu0 %v2271_v34  ;;  %1367 = vmatprep.mubr.f32.mxu1 %v2271_v34 }
  0xee   :  { %1149 = vmatpush1.msra.mxu0 %v205_v50 }
  0xef   :  { %1150 = vmatprep.subr.mxu0 %v2271_v34 }
  0xf0   :  { %2061 = vmatmul.mubr.msk.f32.gmra.mxu1 %vm1230_vm1, %v2391_v51  ;;  %1151 = vmatpush1.msra.mxu0 %v184_v52 }
  0xf1   :  { %1152 = vmatprep.subr.mxu0 %v2271_v34  ;;  %1373 = vmatprep.mubr.f32.mxu1 %v2271_v34 }
  0xf2   :  { %1153 = vmatpush1.msra.mxu0 %v163_v53 }
  0xf3   :  { %1154 = vmatprep.subr.mxu0 %v2271_v34 }
  0xf4   :  { %2062 = vmatmul.mubr.msk.f32.gmra.mxu1 %vm1230_vm1, %v2401_v54  ;;  %1155 = vmatpush1.msra.mxu0 %v142_v55 }
  0xf5   :  { %1156 = vmatprep.subr.mxu0 %v2271_v34  ;;  %1379 = vmatprep.mubr.f32.mxu1 %v2271_v34 }
  0xf6   :  { %1157 = vmatpush1.msra.mxu0 %v121_v56 }
  0xf7   :  { %1158 = vmatprep.subr.mxu0 %v2271_v34 }
  0xf8   :  { %2063 = vmatmul.mubr.msk.f32.gmra.mxu1 %vm1230_vm1, %v2411_v57  ;;  %1159 = vmatpush1.msra.mxu0 %v100_v58 }
  0xf9   :  { %1160 = vmatprep.subr.mxu0 %v2271_v34  ;;  %1385 = vmatprep.mubr.f32.mxu1 %v2271_v34 }
  0xfa   :  { %1161 = vmatpush1.msra.mxu0 %v79_v59 }
  0xfb   :  { %1192 = vmatprep.subr.mxu0 %v2271_v34 }
  0xfc   :  { %2064 = vmatmul.mubr.msk.f32.gmra.mxu1 %vm1230_vm1, %v2421_v60  ;;  %1193 = vmatpush2.msra.mxu0 %v415_v61 }
  0xfd   :  { %1195 = vmatmul.mubr.f32.vlgmr.msra.gmra.mxu0 %v2340_v32  ;;  %1460 = vmatprep.subr.mxu0 %v1226_v62 }
  0xfe   :  { %1391 = vmatprep.mubr.f32.mxu1 %v2271_v34  ;;  %1461 = vmatpush1.msra.mxu0 %v1225_v63 }
  0xff   :  { %1462 = vmatprep.subr.mxu0 %v1219_v0  ;;  %1496 = vmatprep.mubr.f32.mxu0 %v2271_v34 }
 0x100   :  { %2065 = vmatmul.mubr.msk.f32.gmra.mxu1 %vm1230_vm1, %v2430_v1  ;;  %1463 = vmatpush1.msra.mxu0 %v1218_v2 }
 0x101   :  { %2073 = vmatmul.mubr.msk.f32.vlgmr.msra.gmra.mxu0 %vm1230_vm1, %v2349_v3  ;;  %2139 = vmatprep.subr.mxu0 %v1229_v4 }
 0x102   :  { %1397 = vmatprep.mubr.f32.mxu1 %v2271_v34  ;;  %2140 = vmatpush3.msra.mxu0 %v1229_v4 }
 0x103   :  { %1502 = vmatprep.mubr.f32.mxu0 %v2271_v34  ;;  %2141 = vmatprep.subr.mxu0 %v1222_v6 }
 0x104   :  { %2066 = vmatmul.mubr.msk.f32.gmra.mxu1 %vm1230_vm1, %v2441_v7  ;;  %2142 = vmatpush3.msra.mxu0 %v1222_v6 }
 0x105   :  { %2074 = vmatmul.mubr.msk.f32.gmra.mxu0 %vm1230_vm1, %v2359_v40  ;;  %1403 = vmatprep.mubr.f32.mxu1 %v2271_v34 }
 0x106   :  { %1508 = vmatprep.mubr.f32.mxu0 %v2271_v34 }
 0x108   :  { %2067 = vmatmul.mubr.msk.f32.gmra.mxu1 %vm1230_vm1, %v2453_v8 }
 0x109   :  { %2075 = vmatmul.mubr.msk.f32.gmra.mxu0 %vm1230_vm1, %v2370_v44  ;;  %1409 = vmatprep.mubr.f32.mxu1 %v2271_v34  ;;  %v2635_v22 = vpop.f32.mrf.mxu0 }
 0x10a   :  { %1514 = vmatprep.mubr.f32.mxu0 %v2271_v34 }
 0x10b   :  { %v2619_v14 = vpop.f32.mrf.mxu1  ;;  %v2641_v25 = vpop.f32.mrf.mxu0 }
 0x10c   :  { %2068 = vmatmul.mubr.msk.f32.gmra.mxu1 %vm1230_vm1, %v2464_v9 }
 0x10d   :  { %2076 = vmatmul.mubr.msk.f32.gmra.mxu0 %vm1230_vm1, %v2381_v48  ;;  %1415 = vmatprep.mubr.f32.mxu1 %v2271_v34  ;;  %v2621_v15 = vpop.f32.mrf.mxu1 }
 0x10e   :  { %1520 = vmatprep.mubr.f32.mxu0 %v2271_v34 }
 0x110   :  { %2069 = vmatmul.mubr.msk.f32.gmra.mxu1 %vm1230_vm1, %v2475_v10 }
 0x111   :  { %2077 = vmatmul.mubr.msk.f32.gmra.mxu0 %vm1230_vm1, %v2391_v51  ;;  %1419 = vmatprep.mubr.f32.mxu1 %v2271_v34 }
 0x112   :  { %1526 = vmatprep.mubr.f32.mxu0 %v2271_v34 }
 0x114   :  { %2070 = vmatmul.mubr.msk.f32.gmra.mxu1 %vm1230_vm1, %v2486_v11 }
 0x115   :  { %2078 = vmatmul.mubr.msk.f32.gmra.mxu0 %vm1230_vm1, %v2401_v54  ;;  %1423 = vmatprep.mubr.f32.mxu1 %v2271_v34 }
 0x116   :  { %1532 = vmatprep.mubr.f32.mxu0 %v2271_v34 }
 0x118   :  { %2071 = vmatmul.mubr.msk.f32.gmra.mxu1 %vm1230_vm1, %v2497_v12 }
 0x119   :  { %2079 = vmatmul.mubr.msk.f32.gmra.mxu0 %vm1230_vm1, %v2411_v57  ;;  %1427 = vmatprep.mubr.f32.mxu1 %v2271_v34 }
 0x11a   :  { %1538 = vmatprep.mubr.f32.mxu0 %v2271_v34 }
 0x11c   :  { %2072 = vmatmul.mubr.msk.f32.gmra.mxu1 %vm1230_vm1, %v2508_v13 }
 0x11d   :  { %2080 = vmatmul.mubr.msk.f32.gmra.mxu0 %vm1230_vm1, %v2421_v60  ;;  %1649 = vmatprep.mubr.f32.mxu1 %v2271_v34 }
 0x11e   :  { %1544 = vmatprep.mubr.f32.mxu0 %v2271_v34 }
 0x120   :  { %2089 = vmatmul.mubr.msk.f32.vlgmr.msra.gmra.mxu1 %vm1230_vm1, %v2349_v3 }
 0x121   :  { %2081 = vmatmul.mubr.msk.f32.gmra.mxu0 %vm1230_vm1, %v2430_v1  ;;  %1655 = vmatprep.mubr.f32.mxu1 %v2271_v34 }
 0x122   :  { %1550 = vmatprep.mubr.f32.mxu0 %v2271_v34 }
 0x124   :  { %2090 = vmatmul.mubr.msk.f32.gmra.mxu1 %vm1230_vm1, %v2359_v40 }
 0x125   :  { %2082 = vmatmul.mubr.msk.f32.gmra.mxu0 %vm1230_vm1, %v2441_v7  ;;  %1661 = vmatprep.mubr.f32.mxu1 %v2271_v34 }
 0x126   :  { %1556 = vmatprep.mubr.f32.mxu0 %v2271_v34 }
 0x128   :  { %2091 = vmatmul.mubr.msk.f32.gmra.mxu1 %vm1230_vm1, %v2370_v44 }
 0x129   :  { %2083 = vmatmul.mubr.msk.f32.gmra.mxu0 %vm1230_vm1, %v2453_v8  ;;  %1667 = vmatprep.mubr.f32.mxu1 %v2271_v34 }
 0x12a   :  { %1562 = vmatprep.mubr.f32.mxu0 %v2271_v34 }
 0x12c   :  { %2092 = vmatmul.mubr.msk.f32.gmra.mxu1 %vm1230_vm1, %v2381_v48 }
 0x12d   :  { %2084 = vmatmul.mubr.msk.f32.gmra.mxu0 %vm1230_vm1, %v2464_v9  ;;  %1673 = vmatprep.mubr.f32.mxu1 %v2271_v34  ;;  %v2643_v26 = vpop.f32.mrf.mxu0 }
 0x12e   :  { %1568 = vmatprep.mubr.f32.mxu0 %v2271_v34 }
 0x12f   :  { %v2623_v16 = vpop.f32.mrf.mxu1  ;;  %v2645_v29 = vpop.f32.mrf.mxu0 }
 0x130   :  { %2093 = vmatmul.mubr.msk.f32.gmra.mxu1 %vm1230_vm1, %v2391_v51 }
 0x131   :  { %2085 = vmatmul.mubr.msk.f32.gmra.mxu0 %vm1230_vm1, %v2475_v10  ;;  %1679 = vmatprep.mubr.f32.mxu1 %v2271_v34  ;;  %v2625_v17 = vpop.f32.mrf.mxu1 }
 0x132   :  { %1572 = vmatprep.mubr.f32.mxu0 %v2271_v34 }
 0x134   :  { %2094 = vmatmul.mubr.msk.f32.gmra.mxu1 %vm1230_vm1, %v2401_v54 }
 0x135   :  { %2086 = vmatmul.mubr.msk.f32.gmra.mxu0 %vm1230_vm1, %v2486_v11  ;;  %1685 = vmatprep.mubr.f32.mxu1 %v2271_v34 }
 0x136   :  { %1576 = vmatprep.mubr.f32.mxu0 %v2271_v34 }
 0x138   :  { %2095 = vmatmul.mubr.msk.f32.gmra.mxu1 %vm1230_vm1, %v2411_v57 }
 0x139   :  { %2087 = vmatmul.mubr.msk.f32.gmra.mxu0 %vm1230_vm1, %v2497_v12  ;;  %1691 = vmatprep.mubr.f32.mxu1 %v2271_v34 }
 0x13a   :  { %1580 = vmatprep.mubr.f32.mxu0 %v2271_v34 }
 0x13c   :  { %2096 = vmatmul.mubr.msk.f32.gmra.mxu1 %vm1230_vm1, %v2421_v60 }
 0x13d   :  { %2088 = vmatmul.mubr.msk.f32.gmra.mxu0 %vm1230_vm1, %v2508_v13  ;;  %1697 = vmatprep.mubr.f32.mxu1 %v2271_v34 }
 0x13e   :  { %2143 = vmatprep.mubr.msk.f32.mxu0 %vm1230_vm1, %v2349_v3 }
 0x140   :  { %2097 = vmatmul.mubr.msk.f32.gmra.mxu1 %vm1230_vm1, %v2430_v1 }
 0x141   :  { %2144 = vmatmul.mubr.msk.f32.vlgmr.msra.gmra.mxu0 %vm1230_vm1, %v2359_v40  ;;  %1703 = vmatprep.mubr.f32.mxu1 %v2271_v34 }
 0x142   :  { %2146 = vmatprep.mubr.msk.f32.mxu0 %vm1230_vm1, %v2370_v44 }
 0x144   :  { %2098 = vmatmul.mubr.msk.f32.gmra.mxu1 %vm1230_vm1, %v2441_v7 }
 0x145   :  { %2147 = vmatmul.mubr.msk.f32.gmra.mxu0 %vm1230_vm1, %v2381_v48  ;;  %1709 = vmatprep.mubr.f32.mxu1 %v2271_v34 }
 0x146   :  { %2149 = vmatprep.mubr.msk.f32.mxu0 %vm1230_vm1, %v2391_v51 }
 0x148   :  { %2099 = vmatmul.mubr.msk.f32.gmra.mxu1 %vm1230_vm1, %v2453_v8 }
 0x149   :  { %2150 = vmatmul.mubr.msk.f32.gmra.mxu0 %vm1230_vm1, %v2401_v54  ;;  %1715 = vmatprep.mubr.f32.mxu1 %v2271_v34 }
 0x14a   :  { %2152 = vmatprep.mubr.msk.f32.mxu0 %vm1230_vm1, %v2411_v57 }
 0x14c   :  { %2100 = vmatmul.mubr.msk.f32.gmra.mxu1 %vm1230_vm1, %v2464_v9 }
 0x14d   :  { %2153 = vmatmul.mubr.msk.f32.gmra.mxu0 %vm1230_vm1, %v2421_v60  ;;  %1721 = vmatprep.mubr.f32.mxu1 %v2271_v34 }
 0x14e   :  { %2155 = vmatprep.mubr.msk.f32.mxu0 %vm1230_vm1, %v2430_v1 }
 0x150   :  { %2101 = vmatmul.mubr.msk.f32.gmra.mxu1 %vm1230_vm1, %v2475_v10 }
 0x151   :  { %2156 = vmatmul.mubr.msk.f32.gmra.mxu0 %vm1230_vm1, %v2441_v7  ;;  %1725 = vmatprep.mubr.f32.mxu1 %v2271_v34  ;;  %v770_v32 = vpop.f32.mrf.mxu0 }
 0x152   :  { %2158 = vmatprep.mubr.msk.f32.mxu0 %vm1230_vm1, %v2453_v8 }
 0x153   :  { %v2627_v18 = vpop.f32.mrf.mxu1  ;;  %v2652_v46 = vpop.f32.mrf.mxu0 }
 0x154   :  { %2102 = vmatmul.mubr.msk.f32.gmra.mxu1 %vm1230_vm1, %v2486_v11 }
 0x155   :  { %2159 = vmatmul.mubr.msk.f32.gmra.mxu0 %vm1230_vm1, %v2464_v9  ;;  %1729 = vmatprep.mubr.f32.mxu1 %v2271_v34  ;;  %v2629_v19 = vpop.f32.mrf.mxu1 }
 0x156   :  { %2161 = vmatprep.mubr.msk.f32.mxu0 %vm1230_vm1, %v2475_v10 }
 0x158   :  { %2103 = vmatmul.mubr.msk.f32.gmra.mxu1 %vm1230_vm1, %v2497_v12 }
 0x159   :  { %2162 = vmatmul.mubr.msk.f32.gmra.mxu0 %vm1230_vm1, %v2486_v11  ;;  %1733 = vmatprep.mubr.f32.mxu1 %v2271_v34 }
 0x15a   :  { %2164 = vmatprep.mubr.msk.f32.mxu0 %vm1230_vm1, %v2497_v12 }
 0x15c   :  { %2104 = vmatmul.mubr.msk.f32.gmra.mxu1 %vm1230_vm1, %v2508_v13 }
 0x15d   :  { %2165 = vmatmul.mubr.msk.f32.gmra.mxu0 %vm1230_vm1, %v2508_v13 }
 0x175   :  { %v2654_v49 = vpop.f32.mrf.mxu0 }
 0x177   :  { %v2631_v20 = vpop.f32.mrf.mxu1  ;;  %v2656_v52 = vpop.f32.mrf.mxu0 }
 0x179   :  { %v2633_v21 = vpop.f32.mrf.mxu1 }
 0x19a   :  { %v2637_v23 = vpop.f32.mrf.mxu1  ;;  %v2659_v55 = vpop.f32.mrf.mxu0 }
 0x19c   :  { %v2639_v24 = vpop.f32.mrf.mxu1  ;;  %v2664_v63 = vpop.f32.mrf.mxu0 }
 0x1a0   :  { %v1345_v27 = vpop.f32.mrf.mxu1 }
 0x1a1   :  { %v1879_v34 = vmul.f32 %v1345_v27, %v2635_v22 }
 0x1a2   :  { %v1347_v28 = vpop.f32.mrf.mxu1 }
 0x1a3   :  { %v1880_v3 = vmul.f32 %v1347_v28, %v2641_v25 }
 0x1a4   :  { %v1351_v30 = vpop.f32.mrf.mxu1 }
 0x1a5   :  { %v1886_v31 = vmul.f32 %v1351_v30, %v2625_v17 }
 0x1a6   :  { %v1353_v33 = vpop.f32.mrf.mxu1 }
 0x1a7   :  { %v1887_v35 = vmul.f32 %v1353_v33, %v770_v32  ;;  %v1893_v37 = vadd.f32 %v1886_v31, %v1879_v34 }
 0x1a8   :  { %v1357_v36 = vpop.f32.mrf.mxu1 }
 0x1a9   :  { %v1900_v38 = vmul.f32 %v1357_v36, %v2631_v20  ;;  %v1894_v39 = vadd.f32 %v1887_v35, %v1880_v3 }
 0x1aa   :  { %v1359_v5 = vpop.f32.mrf.mxu1 }
 0x1ab   :  { %v1901_v40 = vmul.f32 %v1359_v5, %v2633_v21  ;;  %v1907_v41 = vadd.f32 %v1900_v38, %v1893_v37 }
 0x1ac   :  { %v1363_v42 = vpop.f32.mrf.mxu1 }
 0x1ad   :  { %v1914_v43 = vadd.f32 %v1907_v41, %v1363_v42  ;;  %v1908_v44 = vadd.f32 %v1901_v40, %v1894_v39 }
 0x1ae   :  { %v1365_v45 = vpop.f32.mrf.mxu1 }
 0x1af   :  { %1921 = vst [vmem:[#allocation8] sm:$0xff] %v1914_v43  ;;  %v1915_v47 = vadd.f32 %v1908_v44, %v1365_v45 }
 0x1b0   :  { %v1369_v48 = vpop.f32.mrf.mxu1 }
 0x1b1   :  { %1922 = vst [vmem:[#allocation8 + $0x8] sm:$0xff] %v1915_v47  ;;  %v1928_v56 = vmul.f32 %v1369_v48, %v2635_v22 }
 0x1b2   :  { %v1371_v50 = vpop.f32.mrf.mxu1 }
 0x1b3   :  { %v1929_v59 = vmul.f32 %v1371_v50, %v2641_v25 }
 0x1b4   :  { %v1375_v51 = vpop.f32.mrf.mxu1 }
 0x1b5   :  { %v1935_v53 = vmul.f32 %v1375_v51, %v2625_v17 }
 0x1b6   :  { %v1377_v54 = vpop.f32.mrf.mxu1 }
 0x1b7   :  { %v1936_v57 = vmul.f32 %v1377_v54, %v770_v32  ;;  %v1942_v60 = vadd.f32 %v1935_v53, %v1928_v56 }
 0x1b8   :  { %v1381_v58 = vpop.f32.mrf.mxu1 }
 0x1b9   :  { %v1949_v61 = vmul.f32 %v1381_v58, %v2631_v20  ;;  %v1943_v0 = vadd.f32 %v1936_v57, %v1929_v59 }
 0x1ba   :  { %v1383_v62 = vpop.f32.mrf.mxu1 }
 0x1bb   :  { %v1950_v1 = vmul.f32 %v1383_v62, %v2633_v21  ;;  %v1956_v2 = vadd.f32 %v1949_v61, %v1942_v60 }
 0x1bc   :  { %v1387_v4 = vpop.f32.mrf.mxu1 }
 0x1bd   :  { %v1963_v6 = vadd.f32 %v1956_v2, %v1387_v4  ;;  %v2667_v7 = vpop.f32.mrf.mxu0  ;;  %v1957_v8 = vadd.f32 %v1950_v1, %v1943_v0 }
 0x1be   :  { %v1389_v9 = vpop.f32.mrf.mxu1 }
 0x1bf   :  { %1971 = vst [vmem:[#allocation8 + $0x38] sm:$0xff] %v1963_v6  ;;  %v1964_v10 = vadd.f32 %v1957_v8, %v1389_v9  ;;  %v1198_v11 = vpop.f32.mrf.mxu0 }
 0x1c0   :  { %v1393_v12 = vpop.f32.mrf.mxu1 }
 0x1c1   :  { %1972 = vst [vmem:[#allocation8 + $0x40] sm:$0xff] %v1964_v10  ;;  %v1498_v13 = vpop.f32.mrf.mxu0  ;;  %v1978_v36 = vmul.f32 %v1393_v12, %v2635_v22 }
 0x1c2   :  { %v1395_v27 = vpop.f32.mrf.mxu1  ;;  %v1881_v38 = vmul.f32 %v1498_v13, %v2619_v14 }
 0x1c3   :  { %v1500_v28 = vpop.f32.mrf.mxu0  ;;  %v1979_v40 = vmul.f32 %v1395_v27, %v2641_v25 }
 0x1c4   :  { %v1399_v30 = vpop.f32.mrf.mxu1 }
 0x1c5   :  { %v1985_v31 = vmul.f32 %v1399_v30, %v2625_v17  ;;  %v1504_v33 = vpop.f32.mrf.mxu0  ;;  %v1882_v17 = vmul.f32 %v1500_v28, %v2621_v15 }
 0x1c6   :  { %v1401_v34 = vpop.f32.mrf.mxu1  ;;  %v1888_v35 = vmul.f32 %v1504_v33, %v2652_v46 }
 0x1c7   :  { %v1986_v3 = vmul.f32 %v1401_v34, %v770_v32  ;;  %v1506_v37 = vpop.f32.mrf.mxu0  ;;  %v1992_v41 = vadd.f32 %v1985_v31, %v1978_v36 }
 0x1c8   :  { %v1405_v5 = vpop.f32.mrf.mxu1  ;;  %v1889_v39 = vmul.f32 %v1506_v37, %v2627_v18  ;;  %v1895_v44 = vadd.f32 %v1888_v35, %v1881_v38 }
 0x1c9   :  { %v1999_v42 = vmul.f32 %v1405_v5, %v2631_v20  ;;  %v1510_v43 = vpop.f32.mrf.mxu0  ;;  %v1993_v22 = vadd.f32 %v1986_v3, %v1979_v40 }
 0x1ca   :  { %v1407_v45 = vpop.f32.mrf.mxu1  ;;  %v1902_v47 = vmul.f32 %v1510_v43, %v2659_v55  ;;  %v1896_v51 = vadd.f32 %v1889_v39, %v1882_v17 }
 0x1cb   :  { %v2000_v32 = vmul.f32 %v1407_v45, %v2633_v21  ;;  %v2006_v48 = vadd.f32 %v1999_v42, %v1992_v41  ;;  %v1512_v50 = vpop.f32.mrf.mxu0 }
 0x1cc   :  { %v1411_v53 = vpop.f32.mrf.mxu1  ;;  %v1903_v54 = vmul.f32 %v1512_v50, %v2664_v63  ;;  %v1909_v25 = vadd.f32 %v1902_v47, %v1895_v44 }
 0x1cd   :  { %v2013_v56 = vadd.f32 %v2006_v48, %v1411_v53  ;;  %v2007_v57 = vadd.f32 %v2000_v32, %v1993_v22  ;;  %v1516_v20 = vpop.f32.mrf.mxu0 }
 0x1ce   :  { %v1413_v58 = vpop.f32.mrf.mxu1  ;;  %v1916_v59 = vadd.f32 %v1909_v25, %v1516_v20  ;;  %v1910_v60 = vadd.f32 %v1903_v54, %v1896_v51 }
 0x1cf   :  { %2021 = vst [vmem:[#allocation8 + $0x70] sm:$0xff] %v2013_v56  ;;  %v2014_v61 = vadd.f32 %v2007_v57, %v1413_v58  ;;  %v1518_v62 = vpop.f32.mrf.mxu0 }
 0x1d0   :  { %1923 = vst [vmem:[#allocation8 + $0x10] sm:$0xff] %v1916_v59  ;;  %v1417_v0 = vpop.f32.mrf.mxu1  ;;  %v1917_v1 = vadd.f32 %v1910_v60, %v1518_v62 }
 0x1d1   :  { %2022 = vst [vmem:[#allocation8 + $0x78] sm:$0xff] %v2014_v61  ;;  %v1522_v21 = vpop.f32.mrf.mxu0 }
 0x1d2   :  { %1924 = vst [vmem:[#allocation8 + $0x18] sm:$0xff] %v1917_v1  ;;  %v1418_v2 = vpop.f32.mrf.mxu1  ;;  %v1930_v12 = vmul.f32 %v1522_v21, %v2619_v14 }
 0x1d3   :  { %v1524_v4 = vpop.f32.mrf.mxu0 }
 0x1d4   :  { %v1421_v6 = vpop.f32.mrf.mxu1  ;;  %v1931_v30 = vmul.f32 %v1524_v4, %v2621_v15 }
 0x1d5   :  { %v1528_v8 = vpop.f32.mrf.mxu0 }
 0x1d6   :  { %v1422_v9 = vpop.f32.mrf.mxu1  ;;  %v1937_v10 = vmul.f32 %v1528_v8, %v2652_v46 }
 0x1d7   :  { %v1530_v11 = vpop.f32.mrf.mxu0 }
 0x1d8   :  { %v1425_v13 = vpop.f32.mrf.mxu1  ;;  %v1938_v27 = vmul.f32 %v1530_v11, %v2627_v18  ;;  %v1944_v31 = vadd.f32 %v1937_v10, %v1930_v12 }
 0x1d9   :  { %v1534_v28 = vpop.f32.mrf.mxu0 }
 0x1da   :  { %v1426_v33 = vpop.f32.mrf.mxu1  ;;  %v1951_v34 = vmul.f32 %v1534_v28, %v2659_v55  ;;  %v1945_v36 = vadd.f32 %v1938_v27, %v1931_v30 }
 0x1db   :  { %v1536_v35 = vpop.f32.mrf.mxu0 }
 0x1dc   :  { %v1429_v3 = vpop.f32.mrf.mxu1  ;;  %v1952_v37 = vmul.f32 %v1536_v35, %v2664_v63  ;;  %v1958_v38 = vadd.f32 %v1951_v34, %v1944_v31 }
 0x1dd   :  { %v1540_v5 = vpop.f32.mrf.mxu0 }
 0x1de   :  { %v1430_v39 = vpop.f32.mrf.mxu1  ;;  %v1965_v40 = vadd.f32 %v1958_v38, %v1540_v5  ;;  %v1959_v41 = vadd.f32 %v1952_v37, %v1945_v36 }
 0x1df   :  { %v1542_v42 = vpop.f32.mrf.mxu0 }
 0x1e0   :  { %1973 = vst [vmem:[#allocation8 + $0x48] sm:$0xff] %v1965_v40  ;;  %v1966_v43 = vadd.f32 %v1959_v41, %v1542_v42  ;;  %v1651_v17 = vpop.f32.mrf.mxu1 }
 0x1e1   :  { %v1546_v44 = vpop.f32.mrf.mxu0  ;;  %v1883_v53 = vmul.f32 %v1651_v17, %v2643_v26 }
 0x1e2   :  { %1974 = vst [vmem:[#allocation8 + $0x50] sm:$0xff] %v1966_v43  ;;  %v1653_v45 = vpop.f32.mrf.mxu1  ;;  %v1980_v56 = vmul.f32 %v1546_v44, %v2619_v14 }
 0x1e3   :  { %v1548_v47 = vpop.f32.mrf.mxu0  ;;  %v1884_v58 = vmul.f32 %v1653_v45, %v2645_v29 }
 0x1e4   :  { %v1657_v22 = vpop.f32.mrf.mxu1  ;;  %v1981_v62 = vmul.f32 %v1548_v47, %v2621_v15 }
 0x1e5   :  { %v1890_v32 = vmul.f32 %v1657_v22, %v2629_v19  ;;  %v1552_v48 = vpop.f32.mrf.mxu0 }
 0x1e6   :  { %v1987_v50 = vmul.f32 %v1552_v48, %v2652_v46  ;;  %v1659_v51 = vpop.f32.mrf.mxu1 }
 0x1e7   :  { %v1891_v54 = vmul.f32 %v1659_v51, %v2654_v49  ;;  %v1554_v25 = vpop.f32.mrf.mxu0  ;;  %v1897_v59 = vadd.f32 %v1890_v32, %v1883_v53 }
 0x1e8   :  { %v1988_v57 = vmul.f32 %v1554_v25, %v2627_v18  ;;  %v1663_v20 = vpop.f32.mrf.mxu1  ;;  %v1994_v46 = vadd.f32 %v1987_v50, %v1980_v56 }
 0x1e9   :  { %v1904_v60 = vmul.f32 %v1663_v20, %v2637_v23  ;;  %v1558_v61 = vpop.f32.mrf.mxu0  ;;  %v1898_v21 = vadd.f32 %v1891_v54, %v1884_v58 }
 0x1ea   :  { %v2001_v0 = vmul.f32 %v1558_v61, %v2659_v55  ;;  %v1665_v1 = vpop.f32.mrf.mxu1  ;;  %v1995_v6 = vadd.f32 %v1988_v57, %v1981_v62 }
 0x1eb   :  { %v1905_v2 = vmul.f32 %v1665_v1, %v2639_v24  ;;  %v1560_v4 = vpop.f32.mrf.mxu0  ;;  %v1911_v14 = vadd.f32 %v1904_v60, %v1897_v59 }
 0x1ec   :  { %v2002_v18 = vmul.f32 %v1560_v4, %v2664_v63  ;;  %v1669_v8 = vpop.f32.mrf.mxu1  ;;  %v2008_v9 = vadd.f32 %v2001_v0, %v1994_v46 }
 0x1ed   :  { %v1918_v10 = vadd.f32 %v1911_v14, %v1669_v8  ;;  %v1564_v11 = vpop.f32.mrf.mxu0  ;;  %v1912_v12 = vadd.f32 %v1905_v2, %v1898_v21 }
 0x1ee   :  { %v2015_v13 = vadd.f32 %v2008_v9, %v1564_v11  ;;  %v1671_v27 = vpop.f32.mrf.mxu1  ;;  %v2009_v15 = vadd.f32 %v2002_v18, %v1995_v6 }
 0x1ef   :  { %1925 = vst [vmem:[#allocation8 + $0x20] sm:$0xff] %v1918_v10  ;;  %v1919_v28 = vadd.f32 %v1912_v12, %v1671_v27  ;;  %v1566_v55 = vpop.f32.mrf.mxu0 }
 0x1f0   :  { %2023 = vst [vmem:[#allocation8 + $0x80] sm:$0xff] %v2015_v13  ;;  %v2016_v30 = vadd.f32 %v2009_v15, %v1566_v55  ;;  %v1675_v31 = vpop.f32.mrf.mxu1 }
 0x1f1   :  { %1926 = vst [vmem:[#allocation8 + $0x28] sm:$0xff] %v1919_v28  ;;  %v1570_v33 = vpop.f32.mrf.mxu0  ;;  %v1932_v38 = vmul.f32 %v1675_v31, %v2643_v26 }
 0x1f2   :  { %2024 = vst [vmem:[#allocation8 + $0x88] sm:$0xff] %v2016_v30  ;;  %v1677_v34 = vpop.f32.mrf.mxu1 }
 0x1f3   :  { %v1571_v35 = vpop.f32.mrf.mxu0  ;;  %v1933_v41 = vmul.f32 %v1677_v34, %v2645_v29 }
 0x1f4   :  { %v1681_v63 = vpop.f32.mrf.mxu1 }
 0x1f5   :  { %v1939_v36 = vmul.f32 %v1681_v63, %v2629_v19  ;;  %v1574_v3 = vpop.f32.mrf.mxu0 }
 0x1f6   :  { %v1683_v37 = vpop.f32.mrf.mxu1 }
 0x1f7   :  { %v1940_v5 = vmul.f32 %v1683_v37, %v2654_v49  ;;  %v1575_v39 = vpop.f32.mrf.mxu0  ;;  %v1946_v42 = vadd.f32 %v1939_v36, %v1932_v38 }
 0x1f8   :  { %v1687_v40 = vpop.f32.mrf.mxu1 }
 0x1f9   :  { %v1953_v43 = vmul.f32 %v1687_v40, %v2637_v23  ;;  %v1578_v17 = vpop.f32.mrf.mxu0  ;;  %v1947_v45 = vadd.f32 %v1940_v5, %v1933_v41 }
 0x1fa   :  { %v1689_v44 = vpop.f32.mrf.mxu1 }
 0x1fb   :  { %v1954_v47 = vmul.f32 %v1689_v44, %v2639_v24  ;;  %v1579_v22 = vpop.f32.mrf.mxu0  ;;  %v1960_v32 = vadd.f32 %v1953_v43, %v1946_v42 }
 0x1fc   :  { %v1693_v48 = vpop.f32.mrf.mxu1 }
 0x1fd   :  { %v1967_v50 = vadd.f32 %v1960_v32, %v1693_v48  ;;  %v1582_v51 = vpop.f32.mrf.mxu0  ;;  %v1961_v53 = vadd.f32 %v1954_v47, %v1947_v45 }
 0x1fe   :  { %v1695_v54 = vpop.f32.mrf.mxu1 }
 0x1ff   :  { %1975 = vst [vmem:[#allocation8 + $0x58] sm:$0xff] %v1967_v50  ;;  %v1968_v25 = vadd.f32 %v1961_v53, %v1695_v54  ;;  %v1583_v56 = vpop.f32.mrf.mxu0 }
 0x200   :  { %v1699_v57 = vpop.f32.mrf.mxu1 }
 0x201   :  { %1976 = vst [vmem:[#allocation8 + $0x60] sm:$0xff] %v1968_v25  ;;  %v2145_v20 = vpop.f32.mrf.mxu0  ;;  %v1982_v21 = vmul.f32 %v1699_v57, %v2643_v26 }
 0x202   :  { %v1701_v58 = vpop.f32.mrf.mxu1  ;;  %v1892_v0 = vmul.f32 %v2145_v20, %v2656_v52 }
 0x203   :  { %v1804_v59 = vpop.f32.mrf.mxu0  ;;  %v1983_v8 = vmul.f32 %v1701_v58, %v2645_v29 }
 0x204   :  { %v1705_v60 = vpop.f32.mrf.mxu1  ;;  %v1885_v61 = vmul.f32 %v1804_v59, %v2623_v16 }
 0x205   :  { %v1989_v62 = vmul.f32 %v1705_v60, %v2629_v19  ;;  %v2148_v46 = vpop.f32.mrf.mxu0 }
 0x206   :  { %v1707_v1 = vpop.f32.mrf.mxu1  ;;  %v1899_v14 = vadd.f32 %v1892_v0, %v1885_v61 }
 0x207   :  { %v1990_v2 = vmul.f32 %v1707_v1, %v2654_v49  ;;  %v1814_v4 = vpop.f32.mrf.mxu0  ;;  %v1996_v9 = vadd.f32 %v1989_v62, %v1982_v21 }
 0x208   :  { %v1711_v6 = vpop.f32.mrf.mxu1  ;;  %v1906_v18 = vmul.f32 %v1814_v4, %v2667_v7 }
 0x209   :  { %v2003_v10 = vmul.f32 %v1711_v6, %v2637_v23  ;;  %v2151_v11 = vpop.f32.mrf.mxu0  ;;  %v1997_v13 = vadd.f32 %v1990_v2, %v1983_v8 }
 0x20a   :  { %v1913_v19 = vadd.f32 %v1906_v18, %v1899_v14  ;;  %v1713_v12 = vpop.f32.mrf.mxu1  ;;  %v1941_v29 = vmul.f32 %v2151_v11, %v2656_v52 }
 0x20b   :  { %v2004_v27 = vmul.f32 %v1713_v12, %v2639_v24  ;;  %v2010_v15 = vadd.f32 %v2003_v10, %v1996_v9  ;;  %v1824_v26 = vpop.f32.mrf.mxu0 }
 0x20c   :  { %v1920_v28 = vadd.f32 %v2148_v46, %v1913_v19  ;;  %v1717_v49 = vpop.f32.mrf.mxu1  ;;  %v1934_v55 = vmul.f32 %v1824_v26, %v2623_v16 }
 0x20d   :  { %v2017_v30 = vadd.f32 %v2010_v15, %v1717_v49  ;;  %v2011_v31 = vadd.f32 %v2004_v27, %v1997_v13  ;;  %v2154_v33 = vpop.f32.mrf.mxu0 }
 0x20e   :  { %1927 = vst [vmem:[#allocation8 + $0x30] sm:$0xff] %v1920_v28  ;;  %v1719_v34 = vpop.f32.mrf.mxu1  ;;  %v1948_v63 = vadd.f32 %v1941_v29, %v1934_v55 }
 0x20f   :  { %2025 = vst [vmem:[#allocation8 + $0x90] sm:$0xff] %v2017_v30  ;;  %v2018_v23 = vadd.f32 %v2011_v31, %v1719_v34  ;;  %v1834_v35 = vpop.f32.mrf.mxu0 }
 0x210   :  { %v1955_v36 = vmul.f32 %v1834_v35, %v2667_v7  ;;  %v1723_v24 = vpop.f32.mrf.mxu1 }
 0x211   :  { %2026 = vst [vmem:[#allocation8 + $0x98] sm:$0xff] %v2018_v23  ;;  %v2157_v3 = vpop.f32.mrf.mxu0 }
 0x212   :  { %v1962_v37 = vadd.f32 %v1955_v36, %v1948_v63  ;;  %v1724_v38 = vpop.f32.mrf.mxu1  ;;  %v1991_v43 = vmul.f32 %v2157_v3, %v2656_v52 }
 0x213   :  { %v1844_v5 = vpop.f32.mrf.mxu0 }
 0x214   :  { %v1969_v39 = vadd.f32 %v2154_v33, %v1962_v37  ;;  %v1984_v40 = vmul.f32 %v1844_v5, %v2623_v16  ;;  %v1727_v41 = vpop.f32.mrf.mxu1 }
 0x215   :  { %v2160_v42 = vpop.f32.mrf.mxu0 }
 0x216   :  { %1977 = vst [vmem:[#allocation8 + $0x68] sm:$0xff] %v1969_v39  ;;  %v1728_v17 = vpop.f32.mrf.mxu1  ;;  %v1998_v45 = vadd.f32 %v1991_v43, %v1984_v40 }
 0x217   :  { %v1854_v44 = vpop.f32.mrf.mxu0 }
 0x218   :  { %v2005_v47 = vmul.f32 %v1854_v44, %v2667_v7  ;;  %v1731_v22 = vpop.f32.mrf.mxu1 }
 0x219   :  { %v2163_v32 = vpop.f32.mrf.mxu0 }
 0x21a   :  { %v2012_v48 = vadd.f32 %v2005_v47, %v1998_v45  ;;  %v1732_v50 = vpop.f32.mrf.mxu1 }
 0x21b   :  { %v1864_v51 = vpop.f32.mrf.mxu0 }
 0x21c   :  { %v2019_v53 = vadd.f32 %v2160_v42, %v2012_v48  ;;  %v1735_v54 = vpop.f32.mrf.mxu1 }
 0x21d   :  { %v2166_v16 = vpop.f32.mrf.mxu0 }
 0x21e   :  { %2027 = vst [vmem:[#allocation8 + $0xa0] sm:$0xff] %v2019_v53  ;;  %v1736_v25 = vpop.f32.mrf.mxu1 }
 0x21f   :  { %v1872_v56 = vpop.f32.mrf.mxu0 }
 0x220   :  { %2249 = shalt.err (!%p2246_p5)
}
 0x221   :  { %2039 = dma.vmem_to_hbm [thread:$0]  %s2034_s10, 2688, %s2729_s4, [#allocation4], %s2269_s2, %s2269_s2, %s2270_s30  }
 0x222   :  { %2262 = dma.done.wait [#allocation4], 2688  }
 0x223   :  { %2263 = vsyncadd [#allocation4], 4294964608 }
 0x224   :  { %2043 = vsyncpa [#allocation3], 1 }
 0x225   :  { %2044 = vsyncpa [#allocation6], 1 }
 0x226   :  { %2045 = vsyncpa [#allocation4], 1 }

</bundles_post_ra>
